<compile_context>
chip_gen: v5e
topology: v5e:2x2
jax: 0.10.0
libtpu: 0.0.40
codegen_flags: <defaults>
</compile_context>

<pallas_src>
import functools

import numpy as np
import jax
import jax.numpy as jnp
from jax.experimental import pallas as pl
from jax.experimental.pallas import tpu as pltpu


def _round_up(x, m):
    return (x + m - 1) // m * m


def _choose_n_pad(n_real):
    # Decouple the padding granule from the compute tile: A_hat work is O(n_pad^2),
    # so pad to 128 for small graphs; 512 granule only when its waste is relatively small.
    if n_real >= 4096:
        return _round_up(n_real, 512)
    return _round_up(max(n_real, 8), 128)


def _pick_blk(n_pad):
    # Largest A row-stripe (multiple of 128) that divides n_pad while keeping at least
    # two stripes so dimension_semantics=("parallel",) can split them across v7x's 2 TCs.
    for blk in (512, 256, 128):
        if n_pad % blk == 0 and n_pad // blk >= 2:
            return blk
    return n_pad  # tiny graph: a single stripe


# -----------------------------------------------------------------------------
# Kernel 1: one GIN layer row-stripe = (A_hat_stripe @ z) -> Linear -> ReLU ->
# Linear -> ReLU (outer ReLU of the module), plus masked partial BatchNorm
# statistics (per-stripe sum and centered M2; combined with Chan's formula in JAX).
# Aggregation is bf16 x bf16 on the MXU with an f32 result; z is VMEM-resident.
# -----------------------------------------------------------------------------
def gin_layer_kernel(a_ref, z_ref, w1_ref, b1_ref, w2_ref, b2_ref,
                     h_ref, stats_ref, *, n_real, blk):
    i = pl.program_id(0)  # top-level only (nested-in-when program_id broke lowering)

    # aggregation: bf16 x bf16 -> f32 accumulate (native MXU path)
    agg = jnp.dot(a_ref[...], z_ref[...], preferred_element_type=jnp.float32)

    # MLP: Linear -> ReLU -> Linear, then the module's outer ReLU.
    h1 = jnp.maximum(
        jnp.dot(agg, w1_ref[...], preferred_element_type=jnp.float32) + b1_ref[...], 0.0)
    h2 = jnp.dot(h1, w2_ref[...], preferred_element_type=jnp.float32) + b2_ref[...]
    h3 = jnp.maximum(h2, 0.0)
    h_ref[...] = h3.astype(h_ref.dtype)

    # masked partial BatchNorm statistics (exclude padded rows).
    row = i * blk + jax.lax.broadcasted_iota(jnp.int32, (blk, 1), 0)
    mask = (row < n_real).astype(jnp.float32)              # (blk, 1)
    hm = h3 * mask
    s = jnp.sum(hm, axis=0, keepdims=True)                  # (1, H) stripe sum

    cnt = jnp.clip(n_real - i * blk, 0, blk).astype(jnp.float32)   # real rows in stripe
    inv_cnt = jnp.where(cnt > 0, 1.0 / jnp.maximum(cnt, 1.0), 0.0)
    tile_mean = s * inv_cnt
    d = (h3 - tile_mean) * mask
    m2 = jnp.sum(d * d, axis=0, keepdims=True)               # (1, H) centered M2

    stats_ref[...] = jnp.concatenate([s, m2], axis=0)[None, :, :]   # (1, 2, H)


def gin_layer(a_hat, z, w1, b1, w2, b2, *, n_real, blk):
    n_pad = a_hat.shape[0]
    d_pad = z.shape[1]
    h_pad = w1.shape[1]
    n_row = n_pad // blk
    kernel = functools.partial(gin_layer_kernel, n_real=n_real, blk=blk)
    return pl.pallas_call(
        kernel,
        out_shape=(jax.ShapeDtypeStruct((n_pad, h_pad), jnp.bfloat16),
                   jax.ShapeDtypeStruct((n_row, 2, h_pad), jnp.float32)),
        grid=(n_row,),
        in_specs=[
            pl.BlockSpec((blk, n_pad), lambda i: (i, 0)),     # A_hat row stripe (bf16)
            pl.BlockSpec((n_pad, d_pad), lambda i: (0, 0)),   # z, resident (bf16)
            pl.BlockSpec((d_pad, h_pad), lambda i: (0, 0)),   # w1 (f32)
            pl.BlockSpec((1, h_pad), lambda i: (0, 0)),       # b1
            pl.BlockSpec((h_pad, h_pad), lambda i: (0, 0)),   # w2
            pl.BlockSpec((1, h_pad), lambda i: (0, 0)),       # b2
        ],
        out_specs=(pl.BlockSpec((blk, h_pad), lambda i: (i, 0)),
                   pl.BlockSpec((1, 2, h_pad), lambda i: (i, 0, 0))),
        compiler_params=pltpu.CompilerParams(
            dimension_semantics=("parallel",),
            # 48 MiB is safe on v7x (64 MiB physical); v5e/v6e could go to ~96 MiB.
            vmem_limit_bytes=48 * 1024 * 1024),
    )(a_hat, z, w1, b1, w2, b2)


# -----------------------------------------------------------------------------
# Kernel 2: fused BatchNorm affine + global_add_pool partials.
# Writes the normalized layer output (bf16, lane-dense) and emits per-row-stripe
# pooled partial sums via a tiny bf16 matmul on the just-normalized tile.
# -----------------------------------------------------------------------------
def bn_pool_kernel(h_ref, scale_ref, shift_ref, p_ref, z_ref, g_ref):
    y = h_ref[...].astype(jnp.float32) * scale_ref[...] + shift_ref[...]
    yb = y.astype(jnp.bfloat16)
    z_ref[...] = yb
    g_ref[...] = jnp.dot(p_ref[...], yb,
                         preferred_element_type=jnp.float32)[None, :, :]


def bn_pool(h3, scale, shift, pool_mat, *, blk):
    n_pad, h_pad = h3.shape
    g_pad = pool_mat.shape[0]
    n_row = n_pad // blk
    return pl.pallas_call(
        bn_pool_kernel,
        out_shape=(jax.ShapeDtypeStruct((n_pad, h_pad), jnp.bfloat16),
                   jax.ShapeDtypeStruct((n_row, g_pad, h_pad), jnp.float32)),
        grid=(n_row,),
        in_specs=[
            pl.BlockSpec((blk, h_pad), lambda i: (i, 0)),     # pre-BN activations (bf16)
            pl.BlockSpec((1, h_pad), lambda i: (0, 0)),       # BN scale
            pl.BlockSpec((1, h_pad), lambda i: (0, 0)),       # BN shift
            pl.BlockSpec((g_pad, blk), lambda i: (0, i)),     # pooling matrix stripe (bf16)
        ],
        out_specs=(pl.BlockSpec((blk, h_pad), lambda i: (i, 0)),
                   pl.BlockSpec((1, g_pad, h_pad), lambda i: (i, 0, 0))),
        compiler_params=pltpu.CompilerParams(
            dimension_semantics=("parallel",),
            vmem_limit_bytes=48 * 1024 * 1024),
    )(h3, scale, shift, pool_mat)


# -----------------------------------------------------------------------------
# Graph preprocessing (hoisted out of the per-forward path; graph is static).
# -----------------------------------------------------------------------------
def build_graph_tensors(edge_index, batch, n_real, n_pad, g_pad):
    src = edge_index[0].astype(jnp.int32)
    dst = edge_index[1].astype(jnp.int32)
    a = jnp.zeros((n_pad, n_pad), jnp.float32).at[dst, src].add(1.0)
    ids = jnp.arange(n_real)
    a = a.at[ids, ids].add(1.0)                      # (1 + eps) * z_i with eps = 0
    # bf16 storage is exact only while every entry (in-degree incl. duplicate edges, +1)
    # is <= 256; guard it so multigraphs with heavy duplication fall out loudly.
    assert float(jnp.max(a)) <= 256.0, "A_hat entry too large for exact bf16 storage"
    a_hat = a.astype(jnp.bfloat16)

    batch_pad = jnp.full((n_pad,), -1, jnp.int32).at[:n_real].set(batch.astype(jnp.int32))
    pool_mat = (batch_pad[None, :] ==
                jnp.arange(g_pad, dtype=jnp.int32)[:, None]).astype(jnp.bfloat16)
    return a_hat, pool_mat


# -----------------------------------------------------------------------------
# Parameters (PyTorch default inits) and the forward pass glue.
# -----------------------------------------------------------------------------
def init_params(key, input_dim, hidden_dim, num_layers):
    params = []
    for i in range(num_layers):
        din = input_dim if i == 0 else hidden_dim
        key, k1, k2, k3, k4 = jax.random.split(key, 5)
        s1 = 1.0 / float(np.sqrt(din))
        s2 = 1.0 / float(np.sqrt(hidden_dim))
        params.append(dict(
            w1=jax.random.uniform(k1, (din, hidden_dim), jnp.float32, -s1, s1),
            b1=jax.random.uniform(k2, (hidden_dim,), jnp.float32, -s1, s1),
            w2=jax.random.uniform(k3, (hidden_dim, hidden_dim), jnp.float32, -s2, s2),
            b2=jax.random.uniform(k4, (hidden_dim,), jnp.float32, -s2, s2),
            gamma=jnp.ones((hidden_dim,), jnp.float32),
            beta=jnp.zeros((hidden_dim,), jnp.float32),
        ))
    # NOTE: self.project exists in __init__ but is never used in forward -> not instantiated.
    return params


def _pad2(a, rows, cols):
    return jnp.pad(a, ((0, rows - a.shape[0]), (0, cols - a.shape[1])))


def _pad1(a, n, value=0.0):
    return jnp.pad(a, (0, n - a.shape[0]), constant_values=value)


def gconv_forward(params, x, a_hat, pool_mat, *, n_real, num_graphs):
    num_layers = len(params)
    hidden = params[0]["w1"].shape[1]
    h_pad = _round_up(hidden, 128)
    n_pad = a_hat.shape[0]
    blk = _pick_blk(n_pad)
    n_row = n_pad // blk

    d_in = x.shape[1]
    d_in_pad = _round_up(d_in, 128)
    z_arr = _pad2(x, n_pad, d_in_pad).astype(jnp.bfloat16)

    # static per-stripe real-row counts for the BN variance combine
    counts = np.clip(n_real - np.arange(n_row) * blk, 0, blk).astype(np.float32)
    counts_j = jnp.asarray(counts)[:, None]                 # (n_row, 1)
    inv_n = 1.0 / float(n_real)

    zs, gs = [], []
    for layer in params:
        d_pad = z_arr.shape[1]
        w1 = _pad2(layer["w1"], d_pad, h_pad)
        b1 = _pad1(layer["b1"], h_pad)[None, :]
        w2 = _pad2(layer["w2"], h_pad, h_pad)
        b2 = _pad1(layer["b2"], h_pad)[None, :]
        gamma = _pad1(layer["gamma"], h_pad, 1.0)
        beta = _pad1(layer["beta"], h_pad, 0.0)

        h3, stats = gin_layer(a_hat, z_arr, w1, b1, w2, b2, n_real=n_real, blk=blk)

        # BatchNorm (training-mode, biased variance) via Chan's parallel combine.
        sums = stats[:, 0, :]                               # (n_row, H)
        m2s = stats[:, 1, :]                                # (n_row, H)
        mean = jnp.sum(sums, axis=0) * inv_n
        tile_means = sums / jnp.maximum(counts_j, 1.0)
        var = (jnp.sum(m2s, axis=0) +
               jnp.sum(counts_j * (tile_means - mean[None, :]) ** 2, axis=0)) * inv_n
        var = jnp.maximum(var, 0.0)
        scale = gamma * jax.lax.rsqrt(var + 1e-5)
        shift = beta - mean * scale

        z_arr, gpart = bn_pool(h3, scale[None, :], shift[None, :], pool_mat, blk=blk)
        zs.append(z_arr)                                    # (n_pad, h_pad) bf16
        gs.append(jnp.sum(gpart, axis=0))                   # (g_pad, h_pad) f32

    z_cat = jnp.concatenate(
        [z[:n_real, :hidden].astype(jnp.float32) for z in zs], axis=1)
    g_cat = jnp.concatenate([g[:num_graphs, :hidden] for g in gs], axis=1)
    return z_cat, g_cat


# -----------------------------------------------------------------------------
# Pure-JAX reference (unpadded, f32) for a light numerical check.
# -----------------------------------------------------------------------------
def gconv_reference(params, x, edge_index, batch, num_graphs):
    hp = jax.lax.Precision.HIGHEST
    n = x.shape[0]
    src, dst = edge_index[0], edge_index[1]
    a_hat = jnp.zeros((n, n), jnp.float32).at[dst, src].add(1.0) + jnp.eye(n, dtype=jnp.float32)
    pool_mat = (batch[None, :] == jnp.arange(num_graphs)[:, None]).astype(jnp.float32)
    z = x
    zs = []
    for layer in params:
        h = jnp.dot(a_hat, z, precision=hp)
        h = jnp.maximum(jnp.dot(h, layer["w1"], precision=hp) + layer["b1"], 0.0)
        h = jnp.dot(h, layer["w2"], precision=hp) + layer["b2"]
        h = jnp.maximum(h, 0.0)
        mean = jnp.mean(h, axis=0)
        var = jnp.mean((h - mean) ** 2, axis=0)
        z = (h - mean) * jax.lax.rsqrt(var + 1e-5) * layer["gamma"] + layer["beta"]
        zs.append(z)
    gs = [jnp.dot(pool_mat, zi, precision=hp) for zi in zs]
    return jnp.concatenate(zs, axis=1), jnp.concatenate(gs, axis=1)


if __name__ == "__main__":
    num_nodes = 300
    input_dim = 48
    hidden_dim = 32
    num_layers = 2
    num_graphs = 2

    key = jax.random.PRNGKey(0)
    key, kx, ke = jax.random.split(key, 3)

    x = jax.random.normal(kx, (num_nodes, input_dim), jnp.float32)

    # deterministic small graph: a ring over all nodes plus a few random edges
    ring_src = jnp.arange(num_nodes, dtype=jnp.int32)
    ring_dst = (ring_src + 1) % num_nodes
    extra_src = jax.random.randint(ke, (64,), 0, num_nodes, jnp.int32)
    extra_dst = (extra_src + 7) % num_nodes
    edge_index = jnp.stack([
        jnp.concatenate([ring_src, ring_dst, extra_src]),
        jnp.concatenate([ring_dst, ring_src, extra_dst]),
    ])  # (2, E)

    # first half of the nodes -> graph 0, second half -> graph 1
    batch = jnp.concatenate([
        jnp.zeros(num_nodes // 2, jnp.int32),
        jnp.ones(num_nodes - num_nodes // 2, jnp.int32),
    ])

    params = init_params(key, input_dim, hidden_dim, num_layers)

    # graph tensors built once, outside the per-forward jitted path
    n_pad = _choose_n_pad(num_nodes)
    g_pad = _round_up(num_graphs, 8)
    a_hat, pool_mat = build_graph_tensors(edge_index, batch, num_nodes, n_pad, g_pad)

    fwd = jax.jit(functools.partial(gconv_forward,
                                    n_real=num_nodes, num_graphs=num_graphs))
    z_out, g_out = fwd(params, x, a_hat, pool_mat)
    jax.block_until_ready((z_out, g_out))

    assert z_out.shape == (num_nodes, hidden_dim * num_layers)
    assert g_out.shape == (num_graphs, hidden_dim * num_layers)

    # numerical sanity checks (bf16 activation storage + bf16 MXU aggregation vs.
    # the f32 reference -> loose tolerance on z; g must be consistent with z).
    z_ref, g_ref = jax.jit(functools.partial(gconv_reference, num_graphs=num_graphs))(
        params, x, edge_index, batch)
    np.testing.assert_allclose(np.asarray(z_out), np.asarray(z_ref),
                               rtol=1e-1, atol=1e-1)
    pool_ref = (batch[None, :] == jnp.arange(num_graphs)[:, None]).astype(jnp.float32)
    g_from_z = jnp.dot(pool_ref, z_out, precision=jax.lax.Precision.HIGHEST)
    np.testing.assert_allclose(np.asarray(g_out), np.asarray(g_from_z),
                               rtol=1e-2, atol=5e-2)

    print("KERNEL_OK")
</pallas_src>

<mosaic_0001>
module attributes {stable_mosaic.version = 11 : i64} {
  func.func @bn_pool_kernel(%arg0: i32, %arg1: memref<128x128xbf16, #tpu.memory_space<vmem>>, %arg2: memref<1x128xf32, #tpu.memory_space<vmem>>, %arg3: memref<1x128xf32, #tpu.memory_space<vmem>>, %arg4: memref<8x128xbf16, #tpu.memory_space<vmem>>, %arg5: memref<128x128xbf16, #tpu.memory_space<vmem>>, %arg6: memref<1x8x128xf32, #tpu.memory_space<vmem>>) attributes {dimension_semantics = [#tpu.dimension_semantics<parallel>], iteration_bounds = array<i64: 3>, scalar_prefetch = 0 : i64, scratch_operands = 0 : i64, tpu.core_type = #tpu.core_type<tc>, window_params = [{transform_indices = @transform_0, window_bounds = array<i64: 128, 128>}, {pipeline_mode = #tpu.pipeline_mode<synchronous>, transform_indices = @transform_1, window_bounds = array<i64: 1, 128>}, {pipeline_mode = #tpu.pipeline_mode<synchronous>, transform_indices = @transform_2, window_bounds = array<i64: 1, 128>}, {transform_indices = @transform_3, window_bounds = array<i64: 8, 128>}, {transform_indices = @transform_4, window_bounds = array<i64: 128, 128>}, {transform_indices = @transform_5, window_bounds = array<i64: 1, 8, 128>}]} {
    %c0 = arith.constant 0 : index
    %c0_0 = arith.constant 0 : index
    %0 = vector.load %arg1[%c0, %c0_0] : memref<128x128xbf16, #tpu.memory_space<vmem>>, vector<128x128xbf16>
    %1 = arith.extf %0 : vector<128x128xbf16> to vector<128x128xf32>
    %c0_1 = arith.constant 0 : index
    %c0_2 = arith.constant 0 : index
    %2 = vector.load %arg2[%c0_1, %c0_2] : memref<1x128xf32, #tpu.memory_space<vmem>>, vector<1x128xf32>
    %3 = vector.broadcast %2 : vector<1x128xf32> to vector<128x128xf32>
    %4 = arith.mulf %1, %3 : vector<128x128xf32>
    %c0_3 = arith.constant 0 : index
    %c0_4 = arith.constant 0 : index
    %5 = vector.load %arg3[%c0_3, %c0_4] : memref<1x128xf32, #tpu.memory_space<vmem>>, vector<1x128xf32>
    %6 = vector.broadcast %5 : vector<1x128xf32> to vector<128x128xf32>
    %7 = arith.addf %4, %6 : vector<128x128xf32>
    %8 = arith.truncf %7 : vector<128x128xf32> to vector<128x128xbf16>
    %c0_5 = arith.constant 0 : index
    %c0_6 = arith.constant 0 : index
    %9 = vector.load %arg5[%c0_5, %c0_6] : memref<128x128xbf16, #tpu.memory_space<vmem>>, vector<128x128xbf16>
    tpu.vector_store %arg5[%c0_5, %c0_6], %8 {strides = array<i32>} : memref<128x128xbf16, #tpu.memory_space<vmem>>, vector<128x128xbf16>,
    %c0_7 = arith.constant 0 : index
    %c0_8 = arith.constant 0 : index
    %10 = vector.load %arg4[%c0_7, %c0_8] : memref<8x128xbf16, #tpu.memory_space<vmem>>, vector<8x128xbf16>
    %cst = arith.constant dense<0.000000e+00> : vector<8x128xf32>
    %11 = tpu.matmul %10, %8, %cst {dimension_numbers = #tpu.dot_dimension_numbers<[1], [0], [0], [1], [0, 0, 1, 1], [], []>} : vector<8x128xbf16>, vector<128x128xbf16>, vector<8x128xf32> -> vector<8x128xf32>
    %12 = vector.shape_cast %11 : vector<8x128xf32> to vector<1x8x128xf32>
    %c0_9 = arith.constant 0 : index
    %c0_10 = arith.constant 0 : index
    %c0_11 = arith.constant 0 : index
    %13 = vector.load %arg6[%c0_9, %c0_10, %c0_11] : memref<1x8x128xf32, #tpu.memory_space<vmem>>, vector<1x8x128xf32>
    tpu.vector_store %arg6[%c0_9, %c0_10, %c0_11], %12 {strides = array<i32>} : memref<1x8x128xf32, #tpu.memory_space<vmem>>, vector<1x8x128xf32>,
    return
  }
  func.func @transform_0(%arg0: i32) -> (i32, i32) {
    %c0_i32 = arith.constant 0 : i32
    %c0_i32_0 = arith.constant 0 : i32
    return %arg0, %c0_i32 : i32, i32
  }
  func.func @transform_1(%arg0: i32) -> (i32, i32) {
    %c0_i32 = arith.constant 0 : i32
    %c0_i32_0 = arith.constant 0 : i32
    %c0_i32_1 = arith.constant 0 : i32
    return %c0_i32, %c0_i32_0 : i32, i32
  }
  func.func @transform_2(%arg0: i32) -> (i32, i32) {
    %c0_i32 = arith.constant 0 : i32
    %c0_i32_0 = arith.constant 0 : i32
    %c0_i32_1 = arith.constant 0 : i32
    return %c0_i32, %c0_i32_0 : i32, i32
  }
  func.func @transform_3(%arg0: i32) -> (i32, i32) {
    %c0_i32 = arith.constant 0 : i32
    %c0_i32_0 = arith.constant 0 : i32
    return %c0_i32, %arg0 : i32, i32
  }
  func.func @transform_4(%arg0: i32) -> (i32, i32) {
    %c0_i32 = arith.constant 0 : i32
    %c0_i32_0 = arith.constant 0 : i32
    return %arg0, %c0_i32 : i32, i32
  }
  func.func @transform_5(%arg0: i32) -> (i32, i32, i32) {
    %c0_i32 = arith.constant 0 : i32
    %c0_i32_0 = arith.constant 0 : i32
    %c0_i32_1 = arith.constant 0 : i32
    return %arg0, %c0_i32, %c0_i32_0 : i32, i32, i32
  }
}

module attributes {stable_mosaic.version = 11 : i64} {
  func.func @gin_layer_kernel(%arg0: i32, %arg1: memref<128x384xbf16, #tpu.memory_space<vmem>>, %arg2: memref<384x128xbf16, #tpu.memory_space<vmem>>, %arg3: memref<128x128xf32, #tpu.memory_space<vmem>>, %arg4: memref<1x128xf32, #tpu.memory_space<vmem>>, %arg5: memref<128x128xf32, #tpu.memory_space<vmem>>, %arg6: memref<1x128xf32, #tpu.memory_space<vmem>>, %arg7: memref<128x128xbf16, #tpu.memory_space<vmem>>, %arg8: memref<1x2x128xf32, #tpu.memory_space<vmem>>) attributes {dimension_semantics = [#tpu.dimension_semantics<parallel>], iteration_bounds = array<i64: 3>, scalar_prefetch = 0 : i64, scratch_operands = 0 : i64, tpu.core_type = #tpu.core_type<tc>, window_params = [{transform_indices = @transform_0, window_bounds = array<i64: 128, 384>}, {pipeline_mode = #tpu.pipeline_mode<synchronous>, transform_indices = @transform_1, window_bounds = array<i64: 384, 128>}, {pipeline_mode = #tpu.pipeline_mode<synchronous>, transform_indices = @transform_2, window_bounds = array<i64: 128, 128>}, {pipeline_mode = #tpu.pipeline_mode<synchronous>, transform_indices = @transform_3, window_bounds = array<i64: 1, 128>}, {pipeline_mode = #tpu.pipeline_mode<synchronous>, transform_indices = @transform_4, window_bounds = array<i64: 128, 128>}, {pipeline_mode = #tpu.pipeline_mode<synchronous>, transform_indices = @transform_5, window_bounds = array<i64: 1, 128>}, {transform_indices = @transform_6, window_bounds = array<i64: 128, 128>}, {transform_indices = @transform_7, window_bounds = array<i64: 1, 2, 128>}]} {
    %c0 = arith.constant 0 : index
    %c0_0 = arith.constant 0 : index
    %0 = vector.load %arg1[%c0, %c0_0] : memref<128x384xbf16, #tpu.memory_space<vmem>>, vector<128x384xbf16>
    %c0_1 = arith.constant 0 : index
    %c0_2 = arith.constant 0 : index
    %1 = vector.load %arg2[%c0_1, %c0_2] : memref<384x128xbf16, #tpu.memory_space<vmem>>, vector<384x128xbf16>
    %cst = arith.constant dense<0.000000e+00> : vector<128x128xf32>
    %2 = tpu.matmul %0, %1, %cst {dimension_numbers = #tpu.dot_dimension_numbers<[1], [0], [0], [1], [0, 0, 1, 1], [], []>} : vector<128x384xbf16>, vector<384x128xbf16>, vector<128x128xf32> -> vector<128x128xf32>
    %c0_3 = arith.constant 0 : index
    %c0_4 = arith.constant 0 : index
    %3 = vector.load %arg3[%c0_3, %c0_4] : memref<128x128xf32, #tpu.memory_space<vmem>>, vector<128x128xf32>
    %cst_5 = arith.constant dense<0.000000e+00> : vector<128x128xf32>
    %4 = tpu.matmul %2, %3, %cst_5 {dimension_numbers = #tpu.dot_dimension_numbers<[1], [0], [0], [1], [0, 0, 1, 1], [], []>} : vector<128x128xf32>, vector<128x128xf32>, vector<128x128xf32> -> vector<128x128xf32>
    %c0_6 = arith.constant 0 : index
    %c0_7 = arith.constant 0 : index
    %5 = vector.load %arg4[%c0_6, %c0_7] : memref<1x128xf32, #tpu.memory_space<vmem>>, vector<1x128xf32>
    %6 = vector.broadcast %5 : vector<1x128xf32> to vector<128x128xf32>
    %7 = arith.addf %4, %6 : vector<128x128xf32>
    %cst_8 = arith.constant 0.000000e+00 : f32
    %8 = vector.broadcast %cst_8 : f32 to vector<128x128xf32>
    %9 = arith.maximumf %7, %8 : vector<128x128xf32>
    %c0_9 = arith.constant 0 : index
    %c0_10 = arith.constant 0 : index
    %10 = vector.load %arg5[%c0_9, %c0_10] : memref<128x128xf32, #tpu.memory_space<vmem>>, vector<128x128xf32>
    %cst_11 = arith.constant dense<0.000000e+00> : vector<128x128xf32>
    %11 = tpu.matmul %9, %10, %cst_11 {dimension_numbers = #tpu.dot_dimension_numbers<[1], [0], [0], [1], [0, 0, 1, 1], [], []>} : vector<128x128xf32>, vector<128x128xf32>, vector<128x128xf32> -> vector<128x128xf32>
    %c0_12 = arith.constant 0 : index
    %c0_13 = arith.constant 0 : index
    %12 = vector.load %arg6[%c0_12, %c0_13] : memref<1x128xf32, #tpu.memory_space<vmem>>, vector<1x128xf32>
    %13 = vector.broadcast %12 : vector<1x128xf32> to vector<128x128xf32>
    %14 = arith.addf %11, %13 : vector<128x128xf32>
    %cst_14 = arith.constant 0.000000e+00 : f32
    %15 = vector.broadcast %cst_14 : f32 to vector<128x128xf32>
    %16 = arith.maximumf %14, %15 : vector<128x128xf32>
    %17 = arith.truncf %16 : vector<128x128xf32> to vector<128x128xbf16>
    %c0_15 = arith.constant 0 : index
    %c0_16 = arith.constant 0 : index
    %18 = vector.load %arg7[%c0_15, %c0_16] : memref<128x128xbf16, #tpu.memory_space<vmem>>, vector<128x128xbf16>
    tpu.vector_store %arg7[%c0_15, %c0_16], %17 {strides = array<i32>} : memref<128x128xbf16, #tpu.memory_space<vmem>>, vector<128x128xbf16>,
    %c128_i32 = arith.constant 128 : i32
    %19 = arith.muli %arg0, %c128_i32 : i32
    %20 = tpu.iota {dimensions = array<i32: 0>} : vector<128x1xi32>
    %21 = vector.broadcast %19 : i32 to vector<128x1xi32>
    %22 = arith.addi %21, %20 : vector<128x1xi32>
    %c300_i32 = arith.constant 300 : i32
    %23 = vector.broadcast %c300_i32 : i32 to vector<128x1xi32>
    %24 = arith.cmpi slt, %22, %23 : vector<128x1xi32>
    %25 = arith.extui %24 : vector<128x1xi1> to vector<128x1xi32>
    %26 = arith.sitofp %25 : vector<128x1xi32> to vector<128x1xf32>
    %27 = vector.broadcast %26 : vector<128x1xf32> to vector<128x128xf32>
    %28 = arith.mulf %16, %27 : vector<128x128xf32>
    %cst_17 = arith.constant dense<0.000000e+00> : vector<128xf32>
    %29 = vector.multi_reduction <add>, %28, %cst_17 [0] : vector<128x128xf32> to vector<128xf32>
    %30 = vector.shape_cast %29 : vector<128xf32> to vector<1x128xf32>
    %c128_i32_18 = arith.constant 128 : i32
    %31 = arith.muli %arg0, %c128_i32_18 : i32
    %c300_i32_19 = arith.constant 300 : i32
    %32 = arith.subi %c300_i32_19, %31 : i32
    %c0_i32 = arith.constant 0 : i32
    %c128_i32_20 = arith.constant 128 : i32
    %33 = arith.maxsi %c0_i32, %32 : i32
    %34 = arith.minsi %c128_i32_20, %33 : i32
    %35 = arith.sitofp %34 : i32 to f32
    %cst_21 = arith.constant 0.000000e+00 : f32
    %36 = arith.cmpf ogt, %35, %cst_21 : f32
    %cst_22 = arith.constant 1.000000e+00 : f32
    %37 = arith.maximumf %35, %cst_22 : f32
    %cst_23 = arith.constant 1.000000e+00 : f32
    %38 = arith.divf %cst_23, %37 : f32
    %cst_24 = arith.constant 0.000000e+00 : f32
    %39 = arith.select %36, %38, %cst_24 : f32
    %40 = vector.broadcast %39 : f32 to vector<1x128xf32>
    %41 = arith.mulf %30, %40 : vector<1x128xf32>
    %42 = vector.broadcast %41 : vector<1x128xf32> to vector<128x128xf32>
    %43 = arith.subf %16, %42 : vector<128x128xf32>
    %44 = vector.broadcast %26 : vector<128x1xf32> to vector<128x128xf32>
    %45 = arith.mulf %43, %44 : vector<128x128xf32>
    %46 = arith.mulf %45, %45 : vector<128x128xf32>
    %cst_25 = arith.constant dense<0.000000e+00> : vector<128xf32>
    %47 = vector.multi_reduction <add>, %46, %cst_25 [0] : vector<128x128xf32> to vector<128xf32>
    %48 = vector.shape_cast %47 : vector<128xf32> to vector<1x128xf32>
    %49 = tpu.concatenate %30, %48 in 0 : vector<1x128xf32>, vector<1x128xf32> -> vector<2x128xf32>
    %50 = vector.shape_cast %49 : vector<2x128xf32> to vector<1x2x128xf32>
    %c0_26 = arith.constant 0 : index
    %c0_27 = arith.constant 0 : index
    %c0_28 = arith.constant 0 : index
    %51 = vector.load %arg8[%c0_26, %c0_27, %c0_28] : memref<1x2x128xf32, #tpu.memory_space<vmem>>, vector<1x2x128xf32>
    tpu.vector_store %arg8[%c0_26, %c0_27, %c0_28], %50 {strides = array<i32>} : memref<1x2x128xf32, #tpu.memory_space<vmem>>, vector<1x2x128xf32>,
    return
  }
  func.func @transform_0(%arg0: i32) -> (i32, i32) {
    %c0_i32 = arith.constant 0 : i32
    %c0_i32_0 = arith.constant 0 : i32
    return %arg0, %c0_i32 : i32, i32
  }
  func.func @transform_1(%arg0: i32) -> (i32, i32) {
    %c0_i32 = arith.constant 0 : i32
    %c0_i32_0 = arith.constant 0 : i32
    %c0_i32_1 = arith.constant 0 : i32
    return %c0_i32, %c0_i32_0 : i32, i32
  }
  func.func @transform_2(%arg0: i32) -> (i32, i32) {
    %c0_i32 = arith.constant 0 : i32
    %c0_i32_0 = arith.constant 0 : i32
    %c0_i32_1 = arith.constant 0 : i32
    return %c0_i32, %c0_i32_0 : i32, i32
  }
  func.func @transform_3(%arg0: i32) -> (i32, i32) {
    %c0_i32 = arith.constant 0 : i32
    %c0_i32_0 = arith.constant 0 : i32
    %c0_i32_1 = arith.constant 0 : i32
    return %c0_i32, %c0_i32_0 : i32, i32
  }
  func.func @transform_4(%arg0: i32) -> (i32, i32) {
    %c0_i32 = arith.constant 0 : i32
    %c0_i32_0 = arith.constant 0 : i32
    %c0_i32_1 = arith.constant 0 : i32
    return %c0_i32, %c0_i32_0 : i32, i32
  }
  func.func @transform_5(%arg0: i32) -> (i32, i32) {
    %c0_i32 = arith.constant 0 : i32
    %c0_i32_0 = arith.constant 0 : i32
    %c0_i32_1 = arith.constant 0 : i32
    return %c0_i32, %c0_i32_0 : i32, i32
  }
  func.func @transform_6(%arg0: i32) -> (i32, i32) {
    %c0_i32 = arith.constant 0 : i32
    %c0_i32_0 = arith.constant 0 : i32
    return %arg0, %c0_i32 : i32, i32
  }
  func.func @transform_7(%arg0: i32) -> (i32, i32, i32) {
    %c0_i32 = arith.constant 0 : i32
    %c0_i32_0 = arith.constant 0 : i32
    %c0_i32_1 = arith.constant 0 : i32
    return %arg0, %c0_i32, %c0_i32_0 : i32, i32, i32
  }
}

</mosaic_0001>

<bundles_post_ra>
// kernel: gconv_forward.5
= control target key start
LH: loop header
LB: loop body
LE: loop exit
PB: predicated region body
PF: predicated region fallthrough
CT: control target
= control target key end

     0   :  { %s669_s18 = smov 0   ;;  %s762_s0 = inlined_call_operand.vmem [shape: bf16[384,128], index: 0, kind: input, shape index: {}]   ;;  %s763_s1 = inlined_call_operand.vmem [shape: f32[1,128], index: 1, kind: input, shape index: {}]   ;;  %s764_s2 = inlined_call_operand.vmem [shape: f32[1,128], index: 2, kind: input, shape index: {}]   ;;  %s765_s3 = inlined_call_operand.vmem [shape: bf16[8,384], index: 3, kind: input, shape index: {}]   ;;  %s766_s4 = inlined_call_operand.vmem [shape: bf16[384,128], index: 4, kind: output, shape index: {0}]   ;;  %s767_s5 = inlined_call_operand.vmem [shape: f32[3,8,128], index: 5, kind: output, shape index: {1}]  }
   0x1 LB: > { %s675_s19 = sadd.s32 4294967295, %s637_s18   ;;  %p526_p0 = scmp.ge.s32.totalorder %s637_s18, 1  ;;  %s637_s18 = sphi %s669_s18, %s16_s18  }
   0x2   : > { %p200_p1 = scmp.lt.s32.totalorder %s637_s18, 4 }
   0x4   : > { %p201_p2 = pnand %p526_p0, %p200_p1 }
   0x5   : > { %s527_s20 = sshll.u32 (!%p201_p2), %s675_s19, 4  ;;  %p242_p4 = scmp.lt.s32.totalorder (!%p201_p2), %s675_s19, 2 }
   0x6   : > { %204 = sbr.rel (%p201_p2) target bundleno = 192 (0xc0), region = 36  ;;  %p237_p3 = scmp.lt.s32.totalorder (!%p201_p2), %s527_s20, 47 }
   0xb   : > { %s769_s20 = smov (!%p237_p3, %s527_s20), 47  ;;  %v691_v0 = vld [vmem:[%s763_s1] ss:$0 sm:$0xff]  ;;  %s771_s19 = smov (!%p242_p4, %s675_s19), 2 }
   0xc   : > { %s528_s21 = sshll.u32 %s769_s20, 2  ;;  %v699_v6 = vld [vmem:[%s764_s2] ss:$0 sm:$0xff]  ;;  %s529_s7 = sshll.u32 %s771_s19, 2 }
   0xd   : > { %s686_s24 = scalar_lea.vmem %s762_s0, %s528_s21  ;;  %s717_s6 = scalar_lea.vmem %s766_s4, %s528_s21 }
   0xe   : > { %v613_v1 = vld [vmem:[%s686_s24 + $0x38] sm:$0xff]   ;;  %v612_v2 = vld [vmem:[%s686_s24 + $0x30] sm:$0xff]   ;;  %v611_v3 = vld [vmem:[%s686_s24 + $0x28] sm:$0xff]   ;;  %s245_s10 = scalar_lea.vmem %s765_s3, %s529_s7  ;;  %s532_s11 = sshll.u32 %s771_s19, 3 }
   0xf   : > { %v565_v4 = vunpack.c.l.bf16 %v613_v1  ;;  %v566_v5 = vunpack.c.h.bf16 %v613_v1  ;;  %v561_v7 = vunpack.c.l.bf16 %v612_v2  ;;  %v562_v8 = vunpack.c.h.bf16 %v612_v2  ;;  %v610_v9 = vld [vmem:[%s686_s24 + $0x20] sm:$0xff]   ;;  %v609_v38 = vld [vmem:[%s686_s24 + $0x18] sm:$0xff]   ;;  %v608_v47 = vld [vmem:[%s686_s24 + $0x10] sm:$0xff]   ;;  %s255_s14 = scalar_lea.vmem %s767_s5, %s532_s11 }
  0x10   : > { %v557_v10 = vunpack.c.l.bf16 %v611_v3  ;;  %v558_v11 = vunpack.c.h.bf16 %v611_v3  ;;  %v553_v12 = vunpack.c.l.bf16 %v610_v9  ;;  %v554_v13 = vunpack.c.h.bf16 %v610_v9  ;;  %v607_v51 = vld [vmem:[%s686_s24 + $0x8] sm:$0xff]   ;;  %v536_v55 = vld [vmem:[%s686_s24] sm:$0xff]  }
  0x11   : > { %v306_v14 = vmul.f32 %v691_v0, %v565_v4  ;;  %v307_v15 = vmul.f32 %v691_v0, %v566_v5  ;;  %v304_v16 = vmul.f32 %v691_v0, %v561_v7  ;;  %v305_v17 = vmul.f32 %v691_v0, %v562_v8 }
  0x12   : > { %v302_v18 = vmul.f32 %v691_v0, %v557_v10  ;;  %v303_v19 = vmul.f32 %v691_v0, %v558_v11  ;;  %v300_v20 = vmul.f32 %v691_v0, %v553_v12  ;;  %v301_v21 = vmul.f32 %v691_v0, %v554_v13 }
  0x13   : > { %v326_v22 = vadd.f32 %v699_v6, %v306_v14  ;;  %v327_v23 = vadd.f32 %v699_v6, %v307_v15  ;;  %v324_v24 = vadd.f32 %v699_v6, %v304_v16  ;;  %v325_v25 = vadd.f32 %v699_v6, %v305_v17 }
  0x14   : > { %v322_v26 = vadd.f32 %v699_v6, %v302_v18  ;;  %v323_v27 = vadd.f32 %v699_v6, %v303_v19  ;;  %v320_v28 = vadd.f32 %v699_v6, %v300_v20  ;;  %v321_v29 = vadd.f32 %v699_v6, %v301_v21 }
  0x15   : > { %v342_v30 = vpack.c.bf16 %v326_v22, %v326_v22  ;;  %v343_v31 = vpack.c.bf16 %v327_v23, %v327_v23  ;;  %v605_v32 = vpack.c.bf16 %v327_v23, %v326_v22  ;;  %v340_v33 = vpack.c.bf16 %v324_v24, %v324_v24 }
  0x16   : > { %v341_v34 = vpack.c.bf16 %v325_v25, %v325_v25  ;;  %v600_v35 = vpack.c.bf16 %v325_v25, %v324_v24  ;;  %v338_v36 = vpack.c.bf16 %v322_v26, %v322_v26  ;;  %v339_v37 = vpack.c.bf16 %v323_v27, %v323_v27 }
  0x17   : > { %620 = vst [vmem:[%s717_s6 + $0x38] sm:$0xff] %v605_v32   ;;  %v391_v39 = vunpack.c.l.b16 %v342_v30  ;;  %v392_v40 = vunpack.c.l.b16 %v343_v31  ;;  %v389_v41 = vunpack.c.l.b16 %v340_v33  ;;  %v595_v42 = vpack.c.bf16 %v323_v27, %v322_v26 }
  0x18   : > { %619 = vst [vmem:[%s717_s6 + $0x30] sm:$0xff] %v600_v35   ;;  %v390_v43 = vunpack.c.l.b16 %v341_v34  ;;  %v387_v44 = vunpack.c.l.b16 %v338_v36  ;;  %v388_v45 = vunpack.c.l.b16 %v339_v37  ;;  %v336_v46 = vpack.c.bf16 %v320_v28, %v320_v28 }
  0x19   : > { %v400_v48 = vpack.c.b16 %v392_v40, %v391_v39  ;;  %618 = vst [vmem:[%s717_s6 + $0x28] sm:$0xff] %v595_v42   ;;  %v590_v49 = vpack.c.bf16 %v321_v29, %v320_v28  ;;  %v549_v50 = vunpack.c.l.bf16 %v609_v38  ;;  %v337_v53 = vpack.c.bf16 %v321_v29, %v321_v29  ;;  %v360_v42 = vld [vmem:[%s245_s10] sm:$0xf] }
  0x1a   : > { %v399_v52 = vpack.c.b16 %v390_v43, %v389_v41  ;;  %v550_v54 = vunpack.c.h.bf16 %v609_v38  ;;  %v398_v56 = vpack.c.b16 %v388_v45, %v387_v44  ;;  %v545_v58 = vunpack.c.l.bf16 %v608_v47 }
  0x1b   : > { %409 = vmatpush.bf16.msra.mxu0 %v400_v48  ;;  %617 = vst [vmem:[%s717_s6 + $0x20] sm:$0xff] %v590_v49   ;;  %v298_v57 = vmul.f32 %v691_v0, %v549_v50  ;;  %v546_v59 = vunpack.c.h.bf16 %v608_v47  ;;  %v385_v60 = vunpack.c.l.b16 %v336_v46  ;;  %v541_v62 = vunpack.c.l.bf16 %v607_v51 }
  0x1c   : > { %v299_v61 = vmul.f32 %v691_v0, %v550_v54  ;;  %v542_v63 = vunpack.c.h.bf16 %v607_v51  ;;  %v296_v2 = vmul.f32 %v691_v0, %v545_v58  ;;  %v537_v4 = vunpack.c.l.bf16 %v536_v55 }
  0x1d   : > { %v318_v1 = vadd.f32 %v699_v6, %v298_v57  ;;  %v297_v3 = vmul.f32 %v691_v0, %v546_v59  ;;  %v386_v5 = vunpack.c.l.b16 %v337_v53  ;;  %v294_v8 = vmul.f32 %v691_v0, %v541_v62 }
  0x1e   : > { %v319_v7 = vadd.f32 %v699_v6, %v299_v61  ;;  %v295_v9 = vmul.f32 %v691_v0, %v542_v63  ;;  %v316_v11 = vadd.f32 %v699_v6, %v296_v2  ;;  %v538_v13 = vunpack.c.h.bf16 %v536_v55 }
  0x1f   : > { %410 = vmatpush.bf16.msra.mxu0 %v399_v52  ;;  %v334_v10 = vpack.c.bf16 %v318_v1, %v318_v1  ;;  %v317_v12 = vadd.f32 %v699_v6, %v297_v3  ;;  %v314_v16 = vadd.f32 %v699_v6, %v294_v8  ;;  %v292_v19 = vmul.f32 %v691_v0, %v537_v4 }
  0x20   : > { %v335_v14 = vpack.c.bf16 %v319_v7, %v319_v7  ;;  %v585_v15 = vpack.c.bf16 %v319_v7, %v318_v1  ;;  %v315_v17 = vadd.f32 %v699_v6, %v295_v9  ;;  %v397_v20 = vpack.c.b16 %v386_v5, %v385_v60 }
  0x21   : > { %v580_v18 = vpack.c.bf16 %v317_v12, %v316_v11  ;;  %v383_v21 = vunpack.c.l.b16 %v334_v10  ;;  %v332_v24 = vpack.c.bf16 %v316_v11, %v316_v11  ;;  %v333_v25 = vpack.c.bf16 %v317_v12, %v317_v12 }
  0x22   : > { %616 = vst [vmem:[%s717_s6 + $0x18] sm:$0xff] %v585_v15   ;;  %v575_v22 = vpack.c.bf16 %v315_v17, %v314_v16  ;;  %v384_v23 = vunpack.c.l.b16 %v335_v14  ;;  %v293_v26 = vmul.f32 %v691_v0, %v538_v13  ;;  %v312_v27 = vadd.f32 %v699_v6, %v292_v19 }
  0x23   : > { %411 = vmatpush.bf16.msra.mxu0 %v398_v56  ;;  %615 = vst [vmem:[%s717_s6 + $0x10] sm:$0xff] %v580_v18   ;;  %v330_v29 = vpack.c.bf16 %v314_v16, %v314_v16  ;;  %v331_v30 = vpack.c.bf16 %v315_v17, %v315_v17  ;;  %v381_v32 = vunpack.c.l.b16 %v332_v24  ;;  %v382_v33 = vunpack.c.l.b16 %v333_v25 }
  0x24   : > { %614 = vst [vmem:[%s717_s6 + $0x8] sm:$0xff] %v575_v22   ;;  %v313_v28 = vadd.f32 %v699_v6, %v293_v26  ;;  %v396_v31 = vpack.c.b16 %v384_v23, %v383_v21  ;;  %v328_v0 = vpack.c.bf16 %v312_v27, %v312_v27 }
  0x25   : > { %v379_v35 = vunpack.c.l.b16 %v330_v29  ;;  %v395_v36 = vpack.c.b16 %v382_v33, %v381_v32  ;;  %v380_v37 = vunpack.c.l.b16 %v331_v30 }
  0x26   : > { %v570_v34 = vpack.c.bf16 %v313_v28, %v312_v27  ;;  %v329_v38 = vpack.c.bf16 %v313_v28, %v313_v28  ;;  %v377_v6 = vunpack.c.l.b16 %v328_v0 }
  0x27   : > { %412 = vmatpush.bf16.msra.mxu0 %v397_v20  ;;  %v394_v39 = vpack.c.b16 %v380_v37, %v379_v35 }
  0x28   : > { %571 = vst [vmem:[%s717_s6] sm:$0xff] %v570_v34   ;;  %v378_v40 = vunpack.c.l.b16 %v329_v38 }
  0x2a   : > { %v393_v41 = vpack.c.b16 %v378_v40, %v377_v6 }
  0x2b   : > { %413 = vmatpush.bf16.msra.mxu0 %v396_v31 }
  0x2f   : > { %414 = vmatpush.bf16.msra.mxu0 %v395_v36 }
  0x33   : > { %415 = vmatpush.bf16.msra.mxu0 %v394_v39 }
  0x37   : > { %416 = vmatpush.bf16.msra.mxu0 %v393_v41 }
  0x3a   : > { %417 = vmatmul.bf16.vlgmr.msra.gmra.mxu0 %v360_v42 }
  0xb7   : > { %v418_v43 = vpop.f32.mrf.mxu0 }
  0xb8   : > { %422 = vst [vmem:[%s255_s14] sm:$0xff] %v418_v43 }
  0xbf   : > { %v420_v44 = vpop.f32.mrf.mxu0 }
  0xc0 PF: > { %s16_s18 = sadd.s32 1, %s637_s18  }
  0xc1   : > { %p13_p5 = scmp.ge.s32.totalorder %s16_s18, 5  }
  0xc3   :  { %15 = sbr.rel (!%p13_p5) target bundleno = 1 (0x1), region = 81 }

// kernel: gconv_forward.4
= control target key start
LH: loop header
LB: loop body
LE: loop exit
PB: predicated region body
PF: predicated region fallthrough
CT: control target
= control target key end

     0   :  { %s1749_s24 = smov 0   ;;  %s2236_s0 = inlined_call_operand.vmem [shape: bf16[384,384], index: 0, kind: input, shape index: {}]   ;;  %s2237_s1 = inlined_call_operand.vmem [shape: bf16[384,128], index: 1, kind: input, shape index: {}]   ;;  %s2238_s2 = inlined_call_operand.vmem [shape: f32[128,128], index: 2, kind: input, shape index: {}]   ;;  %s2239_s3 = inlined_call_operand.vmem [shape: f32[1,128], index: 3, kind: input, shape index: {}]   ;;  %s2240_s4 = inlined_call_operand.vmem [shape: f32[128,128], index: 4, kind: input, shape index: {}]   ;;  %s2241_s5 = inlined_call_operand.vmem [shape: f32[1,128], index: 5, kind: input, shape index: {}]   ;;  %s2242_s6 = inlined_call_operand.vmem [shape: bf16[384,128], index: 6, kind: output, shape index: {0}]   ;;  %s2243_s7 = inlined_call_operand.vmem [shape: f32[3,2,128], index: 7, kind: output, shape index: {1}]  }
   0x1 LB: > { %s1755_s25 = sadd.s32 4294967295, %s1705_s24   ;;  %p1339_p0 = scmp.ge.s32.totalorder %s1705_s24, 1  ;;  %s1705_s24 = sphi %s1749_s24, %s18_s24  }
   0x2   : > { %p242_p1 = scmp.lt.s32.totalorder %s1705_s24, 4 }
   0x4   : > { %p243_p2 = pnand %p1339_p0, %p242_p1 }
   0x5   : > { %s1340_s9 = sshll.u32 (!%p243_p2), %s1755_s25, 4  ;;  %s1707_s13 = smov (!%p243_p2), 1.0  }
   0x6   : > { %246 = sbr.rel (%p243_p2) target bundleno = 663 (0x297), region = 44  ;;  %p280_p3 = scmp.lt.s32.totalorder (!%p243_p2), %s1340_s9, 47 }
   0x7   : > { %p292_p7 = scmp.lt.s32.totalorder (!%p243_p2), %s1755_s25, 2 }
   0xb   : > { %v1592_v0 = vld [vmem:[%s2237_s1 + $0x38] sm:$0xff]  ;;  %v1591_v1 = vld [vmem:[%s2237_s1 + $0x30] sm:$0xff]  ;;  %v1590_v2 = vld [vmem:[%s2237_s1 + $0x28] sm:$0xff]  ;;  %s2245_s9 = smov (!%p280_p3, %s1340_s9), 47 }
   0xc   : > { %1658 = vmatpush.bf16.msra.mxu1 %v1592_v0  ;;  %1659 = vmatpush.bf16.msra.mxu2 %v1592_v0  ;;  %v1589_v3 = vld [vmem:[%s2237_s1 + $0x20] sm:$0xff]  ;;  %v1588_v4 = vld [vmem:[%s2237_s1 + $0x18] sm:$0xff]  ;;  %v1587_v5 = vld [vmem:[%s2237_s1 + $0x10] sm:$0xff]  ;;  %s1682_s16 = smul.u32 12, %s2245_s9  ;;  %s1343_s29 = sshll.u32 %s2245_s9, 2 }
   0xd   : > { %648 = vmatpush.bf16.msra.mxu0 %v1592_v0  ;;  %1660 = vmatpush.bf16.msra.mxu3 %v1592_v0  ;;  %v1586_v6 = vld [vmem:[%s2237_s1 + $0x8] sm:$0xff]  ;;  %v1585_v7 = vld [vmem:[%s2237_s1] sm:$0xff]  ;;  %v1608_v12 = vld [vmem:[%s2237_s1 + $0xb8] sm:$0xff]  ;;  %s2011_s10 = scalar_lea.vmem %s2242_s6, %s1343_s29 }
   0xe   : > { %s1787_s21 = scalar_lea.vmem %s2236_s0, %s1682_s16  ;;  %v1600_v13 = vld [vmem:[%s2237_s1 + $0x78] sm:$0xff]  ;;  %v1607_v18 = vld [vmem:[%s2237_s1 + $0xb0] sm:$0xff]  ;;  %v1606_v21 = vld [vmem:[%s2237_s1 + $0xa8] sm:$0xff] }
   0xf   : > { %v1371_v8 = vld [vmem:[%s1787_s21 + $0x30] sm:$0xf]  ;;  %v1568_v9 = vld [vmem:[%s1787_s21 + $0x38] sm:$0xf0]  ;;  %v1395_v10 = vld [vmem:[%s1787_s21 + $0x60] sm:$0xf] }
  0x10   : > { %1661 = vmatpush.bf16.msra.mxu1 %v1591_v1  ;;  %1662 = vmatpush.bf16.msra.mxu2 %v1591_v1  ;;  %v1574_v11 = vld [vmem:[%s1787_s21 + $0x68] sm:$0xf0]  ;;  %v1372_v14 = vor.u32 %v1568_v9, %v1371_v8  ;;  %v1347_v16 = vld [vmem:[%s1787_s21] sm:$0xf]  ;;  %v1599_v19 = vld [vmem:[%s2237_s1 + $0x70] sm:$0xff] }
  0x11   : > { %649 = vmatpush.bf16.msra.mxu0 %v1591_v1  ;;  %1663 = vmatpush.bf16.msra.mxu3 %v1591_v1  ;;  %v1396_v15 = vor.u32 %v1574_v11, %v1395_v10  ;;  %v1562_v17 = vld [vmem:[%s1787_s21 + $0x8] sm:$0xf0]  ;;  %v1605_v23 = vld [vmem:[%s2237_s1 + $0xa0] sm:$0xff]  ;;  %v1383_v25 = vld [vmem:[%s1787_s21 + $0x48] sm:$0xf] }
  0x12   : > { %v1348_v20 = vor.u32 %v1562_v17, %v1347_v16  ;;  %v1598_v22 = vld [vmem:[%s2237_s1 + $0x68] sm:$0xff]  ;;  %v1597_v24 = vld [vmem:[%s2237_s1 + $0x60] sm:$0xff]  ;;  %v1571_v26 = vld [vmem:[%s1787_s21 + $0x50] sm:$0xf0] }
  0x13   : > { %v1407_v27 = vld [vmem:[%s1787_s21 + $0x78] sm:$0xf]  ;;  %v1577_v28 = vld [vmem:[%s1787_s21 + $0x80] sm:$0xf0]  ;;  %v1384_v31 = vor.u32 %v1571_v26, %v1383_v25  ;;  %v1603_v35 = vld [vmem:[%s2237_s1 + $0x90] sm:$0xff] }
  0x14   : > { %1664 = vmatpush.bf16.msra.mxu1 %v1590_v2  ;;  %1665 = vmatpush.bf16.msra.mxu2 %v1590_v2  ;;  %v1604_v29 = vld [vmem:[%s2237_s1 + $0x98] sm:$0xff]  ;;  %v1408_v32 = vor.u32 %v1577_v28, %v1407_v27  ;;  %v1565_v34 = vld [vmem:[%s1787_s21 + $0x20] sm:$0xf0]  ;;  %v1595_v36 = vld [vmem:[%s2237_s1 + $0x50] sm:$0xff] }
  0x15   : > { %650 = vmatpush.bf16.msra.mxu0 %v1590_v2  ;;  %1666 = vmatpush.bf16.msra.mxu3 %v1590_v2  ;;  %v1596_v30 = vld [vmem:[%s2237_s1 + $0x58] sm:$0xff]  ;;  %v1602_v38 = vld [vmem:[%s2237_s1 + $0x88] sm:$0xff]  ;;  %v1601_v40 = vld [vmem:[%s2237_s1 + $0x80] sm:$0xff] }
  0x16   : > { %v1359_v33 = vld [vmem:[%s1787_s21 + $0x18] sm:$0xf]  ;;  %v1594_v39 = vld [vmem:[%s2237_s1 + $0x48] sm:$0xff]  ;;  %v1593_v41 = vld [vmem:[%s2237_s1 + $0x40] sm:$0xff] }
  0x17   : > { %v1360_v37 = vor.u32 %v1565_v34, %v1359_v33  ;;  %v1561_v42 = vld [vmem:[%s1787_s21 + $0x4] sm:$0xf]  ;;  %v1349_v43 = vld [vmem:[%s1787_s21 + $0xc] sm:$0xf0]  ;;  %v1355_v44 = vld [vmem:[%s1787_s21 + $0x8] sm:$0xf] }
  0x18   : > { %1667 = vmatpush.bf16.msra.mxu1 %v1589_v3  ;;  %1668 = vmatpush.bf16.msra.mxu2 %v1589_v3  ;;  %v1563_v45 = vld [vmem:[%s1787_s21 + $0x10] sm:$0xf0]  ;;  %v1352_v46 = vor.u32 %v1561_v42, %v1349_v43  ;;  %v1564_v48 = vld [vmem:[%s1787_s21 + $0x1c] sm:$0xf]  ;;  %v1361_v49 = vld [vmem:[%s1787_s21 + $0x24] sm:$0xf0] }
  0x19   : > { %651 = vmatpush.bf16.msra.mxu0 %v1589_v3  ;;  %1669 = vmatpush.bf16.msra.mxu3 %v1589_v3  ;;  %v1356_v47 = vor.u32 %v1563_v45, %v1355_v44  ;;  %v1367_v50 = vld [vmem:[%s1787_s21 + $0x20] sm:$0xf]  ;;  %v1566_v51 = vld [vmem:[%s1787_s21 + $0x28] sm:$0xf0]  ;;  %v1364_v52 = vor.u32 %v1564_v48, %v1361_v49  ;;  %v1567_v54 = vld [vmem:[%s1787_s21 + $0x34] sm:$0xf] }
  0x1a   : > { %v1368_v53 = vor.u32 %v1566_v51, %v1367_v50  ;;  %v1373_v55 = vld [vmem:[%s1787_s21 + $0x3c] sm:$0xf0]  ;;  %v1379_v56 = vld [vmem:[%s1787_s21 + $0x38] sm:$0xf]  ;;  %v1569_v57 = vld [vmem:[%s1787_s21 + $0x40] sm:$0xf0] }
  0x1b   : > { %v1376_v58 = vor.u32 %v1567_v54, %v1373_v55  ;;  %v1380_v59 = vor.u32 %v1569_v57, %v1379_v56  ;;  %v1570_v60 = vld [vmem:[%s1787_s21 + $0x4c] sm:$0xf]  ;;  %v1385_v61 = vld [vmem:[%s1787_s21 + $0x54] sm:$0xf0]  ;;  %v1391_v62 = vld [vmem:[%s1787_s21 + $0x50] sm:$0xf] }
  0x1c   : > { %1670 = vmatpush.bf16.msra.mxu1 %v1588_v4  ;;  %1671 = vmatpush.bf16.msra.mxu2 %v1588_v4  ;;  %v1572_v63 = vld [vmem:[%s1787_s21 + $0x58] sm:$0xf0]  ;;  %v1388_v0 = vor.u32 %v1570_v60, %v1385_v61  ;;  %v1419_v2 = vld [vmem:[%s1787_s21 + $0x90] sm:$0xf]  ;;  %v1575_v8 = vld [vmem:[%s1787_s21 + $0x70] sm:$0xf0] }
  0x1d   : > { %652 = vmatpush.bf16.msra.mxu0 %v1588_v4  ;;  %1672 = vmatpush.bf16.msra.mxu3 %v1588_v4  ;;  %v1392_v1 = vor.u32 %v1572_v63, %v1391_v62  ;;  %v1580_v3 = vld [vmem:[%s1787_s21 + $0x98] sm:$0xf0]  ;;  %v1431_v11 = vld [vmem:[%s1787_s21 + $0xa8] sm:$0xf]  ;;  %v805_v25 = vld [vmem:[%s2238_s2 + $0x50] sm:$0xff] }
  0x1e   : > { %v1420_v4 = vor.u32 %v1580_v3, %v1419_v2  ;;  %v1576_v16 = vld [vmem:[%s1787_s21 + $0x7c] sm:$0xf]  ;;  %v808_v17 = vld [vmem:[%s2238_s2 + $0x68] sm:$0xff]  ;;  %v803_v27 = vld [vmem:[%s2238_s2 + $0x40] sm:$0xff] }
  0x1f   : > { %v804_v26 = vld [vmem:[%s2238_s2 + $0x48] sm:$0xff]  ;;  %v802_v28 = vld [vmem:[%s2238_s2 + $0x38] sm:$0xff]  ;;  %v1581_v34 = vld [vmem:[%s1787_s21 + $0xa0] sm:$0xf0] }
  0x20   : > { %1673 = vmatpush.bf16.msra.mxu1 %v1587_v5  ;;  %1674 = vmatpush.bf16.msra.mxu2 %v1587_v5  ;;  %v1427_v33 = vld [vmem:[%s1787_s21 + $0x98] sm:$0xf]  ;;  %v795_v43 = vld [vmem:[%s2238_s2] sm:$0xff]  ;;  %v1582_v45 = vld [vmem:[%s1787_s21 + $0xac] sm:$0xf] }
  0x21   : > { %653 = vmatpush.bf16.msra.mxu0 %v1587_v5  ;;  %1675 = vmatpush.bf16.msra.mxu3 %v1587_v5  ;;  %v1573_v5 = vld [vmem:[%s1787_s21 + $0x64] sm:$0xf]  ;;  %v1584_v48 = vld [vmem:[%s1787_s21 + $0xb8] sm:$0xf0] }
  0x24   : > { %1676 = vmatpush.bf16.msra.mxu1 %v1586_v6  ;;  %1677 = vmatpush.bf16.msra.mxu2 %v1586_v6 }
  0x25   : > { %654 = vmatpush.bf16.msra.mxu0 %v1586_v6  ;;  %1678 = vmatpush.bf16.msra.mxu3 %v1586_v6  ;;  %v1397_v6 = vld [vmem:[%s1787_s21 + $0x6c] sm:$0xf0] }
  0x26   : > { %v1400_v9 = vor.u32 %v1573_v5, %v1397_v6 }
  0x28   : > { %1679 = vmatpush.bf16.msra.mxu1 %v1585_v7  ;;  %1680 = vmatpush.bf16.msra.mxu2 %v1585_v7 }
  0x29   : > { %655 = vmatpush.bf16.msra.mxu0 %v1585_v7  ;;  %1681 = vmatpush.bf16.msra.mxu3 %v1585_v7  ;;  %v1403_v7 = vld [vmem:[%s1787_s21 + $0x68] sm:$0xf] }
  0x2a   : > { %v1404_v10 = vor.u32 %v1575_v8, %v1403_v7 }
  0x2b   : > { %666 = vmatmul.bf16.vlgmr.msra.gmra.mxu1 %v1372_v14  ;;  %676 = vmatmul.bf16.vlgmr.msra.gmra.mxu2 %v1396_v15  ;;  %v810_v14 = vld [vmem:[%s2238_s2 + $0x78] sm:$0xff]  ;;  %v809_v15 = vld [vmem:[%s2238_s2 + $0x70] sm:$0xff] }
  0x2c   : > { %746 = vmatpush.bf16.msrb.mxu2 %v1608_v12  ;;  %697 = vmatpush.bf16.msrb.mxu1 %v1600_v13  ;;  %v1583_v12 = vld [vmem:[%s1787_s21 + $0xb0] sm:$0xf0] }
  0x2d   : > { %656 = vmatmul.bf16.vlgmr.msra.gmra.mxu0 %v1348_v20  ;;  %686 = vmatmul.bf16.vlgmr.msra.gmra.mxu3 %v1420_v4  ;;  %v1432_v13 = vor.u32 %v1583_v12, %v1431_v11  ;;  %v1578_v20 = vld [vmem:[%s1787_s21 + $0x88] sm:$0xf0] }
  0x2e   : > { %815 = vmatpush.msrb.mxu3 %v810_v14 }
  0x30   : > { %747 = vmatpush.bf16.msrb.mxu2 %v1607_v18  ;;  %698 = vmatpush.bf16.msrb.mxu1 %v1599_v19  ;;  %v1409_v18 = vld [vmem:[%s1787_s21 + $0x84] sm:$0xf0]  ;;  %v1415_v19 = vld [vmem:[%s1787_s21 + $0x80] sm:$0xf] }
  0x31   : > { %816 = vmatpush.msrb.mxu3 %v809_v15 }
  0x33   : > { %817 = vmatpush.msrb.mxu3 %v808_v17 }
  0x34   : > { %748 = vmatpush.bf16.msrb.mxu2 %v1606_v21  ;;  %699 = vmatpush.bf16.msrb.mxu1 %v1598_v22  ;;  %v807_v21 = vld [vmem:[%s2238_s2 + $0x60] sm:$0xff]  ;;  %v1412_v22 = vor.u32 %v1576_v16, %v1409_v18 }
  0x35   : > { %818 = vmatpush.msrb.mxu3 %v807_v21 }
  0x38   : > { %749 = vmatpush.bf16.msrb.mxu2 %v1605_v23  ;;  %700 = vmatpush.bf16.msrb.mxu1 %v1597_v24  ;;  %v1416_v23 = vor.u32 %v1578_v20, %v1415_v19  ;;  %v806_v24 = vld [vmem:[%s2238_s2 + $0x58] sm:$0xff] }
  0x39   : > { %819 = vmatpush.msrb.mxu3 %v806_v24 }
  0x3b   : > { %671 = vmatmul.bf16.gmra.mxu1 %v1384_v31  ;;  %681 = vmatmul.bf16.gmra.mxu2 %v1408_v32  ;;  %v800_v31 = vld [vmem:[%s2238_s2 + $0x28] sm:$0xff]  ;;  %v1421_v32 = vld [vmem:[%s1787_s21 + $0x9c] sm:$0xf0] }
  0x3c   : > { %750 = vmatpush.bf16.msrb.mxu2 %v1604_v29  ;;  %701 = vmatpush.bf16.msrb.mxu1 %v1596_v30  ;;  %v801_v29 = vld [vmem:[%s2238_s2 + $0x30] sm:$0xff] }
  0x3d   : > { %661 = vmatmul.bf16.gmra.mxu0 %v1360_v37  ;;  %691 = vmatmul.bf16.gmra.mxu3 %v1432_v13  ;;  %v1579_v30 = vld [vmem:[%s1787_s21 + $0x94] sm:$0xf]  ;;  %v1428_v37 = vor.u32 %v1581_v34, %v1427_v33 }
  0x3e   : > { %820 = vmatpush.msrb.mxu3 %v805_v25 }
  0x40   : > { %751 = vmatpush.bf16.msrb.mxu2 %v1603_v35  ;;  %702 = vmatpush.bf16.msrb.mxu1 %v1595_v36  ;;  %v799_v35 = vld [vmem:[%s2238_s2 + $0x20] sm:$0xff]  ;;  %v1424_v36 = vor.u32 %v1579_v30, %v1421_v32 }
  0x41   : > { %821 = vmatpush.msrb.mxu3 %v804_v26 }
  0x43   : > { %822 = vmatpush.msrb.mxu3 %v803_v27 }
  0x44   : > { %752 = vmatpush.bf16.msrb.mxu2 %v1602_v38  ;;  %703 = vmatpush.bf16.msrb.mxu1 %v1594_v39  ;;  %v798_v39 = vld [vmem:[%s2238_s2 + $0x18] sm:$0xff] }
  0x45   : > { %823 = vmatpush.msrb.mxu3 %v802_v28 }
  0x47   : > { %824 = vmatpush.msrb.mxu3 %v801_v29 }
  0x48   : > { %753 = vmatpush.bf16.msrb.mxu2 %v1601_v40  ;;  %704 = vmatpush.bf16.msrb.mxu1 %v1593_v41  ;;  %v797_v40 = vld [vmem:[%s2238_s2 + $0x10] sm:$0xff]  ;;  %v796_v41 = vld [vmem:[%s2238_s2 + $0x8] sm:$0xff] }
  0x49   : > { %825 = vmatpush.msrb.mxu3 %v800_v31 }
  0x4b   : > { %705 = vmatmul.bf16.vlgmr.msrb.gmra.mxu1 %v1352_v46  ;;  %754 = vmatmul.bf16.vlgmr.msrb.gmra.mxu2 %v1356_v47  ;;  %v1433_v46 = vld [vmem:[%s1787_s21 + $0xb4] sm:$0xf0]  ;;  %v1439_v47 = vld [vmem:[%s1787_s21 + $0xb0] sm:$0xf]  ;;  %s1537_s21 = sshll.u32 %s1755_s25, 7  ;;  %s2251_s25 = smov (!%p292_p7, %s1755_s25), 2 }
  0x4c   : > { %826 = vmatpush.msrb.mxu3 %v799_v35  ;;  %v1436_v50 = vor.u32 %v1582_v45, %v1433_v46  ;;  %v1440_v51 = vor.u32 %v1584_v48, %v1439_v47  ;;  %v907_v45 = vld [vmem:[%s2240_s4 + $0x58] sm:$0xff]  ;;  %v906_v46 = vld [vmem:[%s2240_s4 + $0x50] sm:$0xff]  ;;  %v905_v47 = vld [vmem:[%s2240_s4 + $0x48] sm:$0xff]  ;;  %s1149_s9 = ssub.s32 300, %s1537_s21  ;;  %s1344_s16 = sshll.u32 %s2251_s25, 1 }
  0x4d   : > { %p1150_p4 = scmp.gt.s32.totalorder %s1149_s9, 0  ;;  %p1554_p5 = scmp.lt.s32.totalorder %s1149_s9, 128 }
  0x4e   : > { %827 = vmatpush.msrb.mxu3 %v798_v39  ;;  %v909_v39 = vld [vmem:[%s2240_s4 + $0x68] sm:$0xff]  ;;  %s295_s19 = scalar_lea.vmem %s2243_s7, %s1344_s16 }
  0x4f   : > { %s1151_s11 = scalar_select %p1150_p4, %s1149_s9, 0 }
  0x50   : > { %828 = vmatpush.msrb.mxu3 %v797_v40 }
  0x51   : > { %s2247_s11 = smov (!%p1554_p5, %s1151_s11), 128 }
  0x52   : > { %829 = vmatpush.msrb.mxu3 %v796_v41  ;;  %s1154_s12 = scvt.s32.f32 %s2247_s11  ;;  %p1155_p6 = scmp.gt.s32.totalorder %s2247_s11, 0 }
  0x54   : > { %830 = vmatpush.msrb.mxu3 %v795_v43  ;;  %v908_v43 = vld [vmem:[%s2240_s4 + $0x60] sm:$0xff]  ;;  %s1156_s14 = smax.f32 %s1707_s13, %s1154_s12 }
  0x5b   : > { %710 = vmatmul.bf16.gmra.mxu1 %v1364_v52  ;;  %759 = vmatmul.bf16.gmra.mxu2 %v1368_v53 }
  0x6b   : > { %715 = vmatmul.bf16.gmra.mxu1 %v1376_v58  ;;  %764 = vmatmul.bf16.gmra.mxu2 %v1380_v59 }
  0x7b   : > { %720 = vmatmul.bf16.gmra.mxu1 %v1388_v0  ;;  %769 = vmatmul.bf16.gmra.mxu2 %v1392_v1 }
  0x8b   : > { %725 = vmatmul.bf16.gmra.mxu1 %v1400_v9  ;;  %774 = vmatmul.bf16.gmra.mxu2 %v1404_v10 }
  0x9b   : > { %730 = vmatmul.bf16.gmra.mxu1 %v1412_v22  ;;  %779 = vmatmul.bf16.gmra.mxu2 %v1416_v23 }
  0xa8   : > { %v667_v38 = vpop.f32.mrf.mxu1 }
  0xaa   : > { %v657_v55 = vpop.f32.mrf.mxu0 }
  0xab   : > { %735 = vmatmul.bf16.gmra.mxu1 %v1424_v36  ;;  %784 = vmatmul.bf16.gmra.mxu2 %v1428_v37  ;;  %v911_v37 = vld [vmem:[%s2240_s4 + $0x78] sm:$0xff] }
  0xac   : > { %916 = vmatpush.msrb.mxu0 %v911_v37 }
  0xae   : > { %v1929_v42 = vpop.f32.mrf.mxu2 }
  0xb0   : > { %v669_v44 = vpop.f32.mrf.mxu1 }
  0xb2   : > { %v659_v61 = vpop.f32.mrf.mxu0 }
  0xb6   : > { %v679_v49 = vpop.f32.mrf.mxu2 }
  0xb8   : > { %v672_v52 = vpop.f32.mrf.mxu1 }
  0xba   : > { %v662_v3 = vpop.f32.mrf.mxu0 }
  0xbb   : > { %740 = vmatmul.bf16.gmra.mxu1 %v1436_v50  ;;  %789 = vmatmul.bf16.gmra.mxu2 %v1440_v51 }
  0xbe   : > { %v1938_v53 = vpop.f32.mrf.mxu2 }
  0xc0   : > { %v674_v54 = vpop.f32.mrf.mxu1 }
  0xc2   : > { %v664_v8 = vpop.f32.mrf.mxu0 }
  0xc6   : > { %v1940_v56 = vpop.f32.mrf.mxu2 }
  0xc8   : > { %v706_v57 = vpop.f32.mrf.mxu1 }
  0xc9   : > { %v707_v58 = vadd.f32 %v706_v57, %v657_v55  ;;  %v902_v55 = vld [vmem:[%s2240_s4 + $0x30] sm:$0xff]  ;;  %v901_v57 = vld [vmem:[%s2240_s4 + $0x28] sm:$0xff] }
  0xce   : > { %v755_v59 = vpop.f32.mrf.mxu2 }
  0xcf   : > { %v756_v60 = vadd.f32 %v755_v59, %v707_v58  ;;  %v900_v58 = vld [vmem:[%s2240_s4 + $0x20] sm:$0xff] }
  0xd0   : > { %v708_v62 = vpop.f32.mrf.mxu1 }
  0xd1   : > { %831 = vmatmul.f32.vlgmr.msrb.gmra.mxu3 %v756_v60  ;;  %v709_v63 = vadd.f32 %v708_v62, %v659_v61  ;;  %v899_v61 = vld [vmem:[%s2240_s4 + $0x18] sm:$0xff] }
  0xd6   : > { %v757_v0 = vpop.f32.mrf.mxu2 }
  0xd7   : > { %v758_v1 = vadd.f32 %v757_v0, %v709_v63  ;;  %v898_v0 = vld [vmem:[%s2240_s4 + $0x10] sm:$0xff] }
  0xd8   : > { %v711_v2 = vpop.f32.mrf.mxu1 }
  0xd9   : > { %834 = vmatmul.f32.gmra.mxu3 %v758_v1  ;;  %v712_v4 = vadd.f32 %v711_v2, %v662_v3  ;;  %v897_v2 = vld [vmem:[%s2240_s4 + $0x8] sm:$0xff] }
  0xde   : > { %v760_v5 = vpop.f32.mrf.mxu2 }
  0xdf   : > { %v761_v6 = vadd.f32 %v760_v5, %v712_v4  ;;  %v896_v5 = vld [vmem:[%s2240_s4] sm:$0xff] }
  0xe0   : > { %v713_v7 = vpop.f32.mrf.mxu1 }
  0xe1   : > { %837 = vmatmul.f32.gmra.mxu3 %v761_v6  ;;  %v714_v9 = vadd.f32 %v713_v7, %v664_v8 }
  0xe6   : > { %v762_v10 = vpop.f32.mrf.mxu2 }
  0xe7   : > { %v763_v11 = vadd.f32 %v762_v10, %v714_v9 }
  0xe8   : > { %v716_v12 = vpop.f32.mrf.mxu1 }
  0xe9   : > { %840 = vmatmul.f32.gmra.mxu3 %v763_v11  ;;  %v717_v13 = vadd.f32 %v716_v12, %v667_v38  ;;  %v910_v38 = vld [vmem:[%s2240_s4 + $0x70] sm:$0xff] }
  0xea   : > { %917 = vmatpush.msrb.mxu0 %v910_v38 }
  0xec   : > { %918 = vmatpush.msrb.mxu0 %v909_v39 }
  0xee   : > { %v765_v14 = vpop.f32.mrf.mxu2  ;;  %919 = vmatpush.msrb.mxu0 %v908_v43 }
  0xef   : > { %v766_v15 = vadd.f32 %v765_v14, %v717_v13 }
  0xf0   : > { %v718_v16 = vpop.f32.mrf.mxu1  ;;  %920 = vmatpush.msrb.mxu0 %v907_v45 }
  0xf1   : > { %843 = vmatmul.f32.gmra.mxu3 %v766_v15  ;;  %v719_v17 = vadd.f32 %v718_v16, %v669_v44  ;;  %v1695_v16 = vld [vmem:[%s2239_s3] ss:$0 sm:$0xff] }
  0xf2   : > { %921 = vmatpush.msrb.mxu0 %v906_v46 }
  0xf4   : > { %922 = vmatpush.msrb.mxu0 %v905_v47 }
  0xf6   : > { %v767_v18 = vpop.f32.mrf.mxu2 }
  0xf7   : > { %v768_v19 = vadd.f32 %v767_v18, %v719_v17 }
  0xf8   : > { %v721_v20 = vpop.f32.mrf.mxu1 }
  0xf9   : > { %846 = vmatmul.f32.gmra.mxu3 %v768_v19  ;;  %v722_v21 = vadd.f32 %v721_v20, %v672_v52  ;;  %v904_v52 = vld [vmem:[%s2240_s4 + $0x40] sm:$0xff] }
  0xfa   : > { %923 = vmatpush.msrb.mxu0 %v904_v52 }
  0xfe   : > { %v770_v22 = vpop.f32.mrf.mxu2 }
  0xff   : > { %v771_v23 = vadd.f32 %v770_v22, %v722_v21 }
 0x100   : > { %v723_v24 = vpop.f32.mrf.mxu1 }
 0x101   : > { %849 = vmatmul.f32.gmra.mxu3 %v771_v23  ;;  %v724_v25 = vadd.f32 %v723_v24, %v674_v54  ;;  %v903_v54 = vld [vmem:[%s2240_s4 + $0x38] sm:$0xff] }
 0x102   : > { %924 = vmatpush.msrb.mxu0 %v903_v54 }
 0x104   : > { %925 = vmatpush.msrb.mxu0 %v902_v55 }
 0x106   : > { %v772_v26 = vpop.f32.mrf.mxu2  ;;  %926 = vmatpush.msrb.mxu0 %v901_v57 }
 0x107   : > { %v773_v27 = vadd.f32 %v772_v26, %v724_v25 }
 0x108   : > { %v726_v28 = vpop.f32.mrf.mxu1  ;;  %927 = vmatpush.msrb.mxu0 %v900_v58 }
 0x109   : > { %852 = vmatmul.f32.gmra.mxu3 %v773_v27  ;;  %v727_v29 = vadd.f32 %v726_v28, %v1929_v42 }
 0x10a   : > { %928 = vmatpush.msrb.mxu0 %v899_v61 }
 0x10c   : > { %929 = vmatpush.msrb.mxu0 %v898_v0 }
 0x10e   : > { %v775_v30 = vpop.f32.mrf.mxu2  ;;  %930 = vmatpush.msrb.mxu0 %v897_v2  ;;  %v1999_v2 = vld [vmem:[%s2241_s5] ss:$0 sm:$0xff] }
 0x10f   : > { %v776_v31 = vadd.f32 %v775_v30, %v727_v29 }
 0x110   : > { %v728_v32 = vpop.f32.mrf.mxu1  ;;  %931 = vmatpush.msrb.mxu0 %v896_v5 }
 0x111   : > { %855 = vmatmul.f32.gmra.mxu3 %v776_v31  ;;  %v729_v33 = vadd.f32 %v728_v32, %v679_v49  ;;  %v687_v49 = vpop.f32.mrf.mxu3 }
 0x116   : > { %v777_v34 = vpop.f32.mrf.mxu2 }
 0x117   : > { %v778_v35 = vadd.f32 %v777_v34, %v729_v33 }
 0x118   : > { %v731_v36 = vpop.f32.mrf.mxu1 }
 0x119   : > { %858 = vmatmul.f32.gmra.mxu3 %v778_v35  ;;  %v732_v40 = vadd.f32 %v731_v36, %v1938_v53  ;;  %v689_v62 = vpop.f32.mrf.mxu3 }
 0x11e   : > { %v780_v41 = vpop.f32.mrf.mxu2 }
 0x11f   : > { %v781_v42 = vadd.f32 %v780_v41, %v732_v40 }
 0x120   : > { %v733_v44 = vpop.f32.mrf.mxu1 }
 0x121   : > { %861 = vmatmul.f32.gmra.mxu3 %v781_v42  ;;  %v734_v48 = vadd.f32 %v733_v44, %v1940_v56  ;;  %v692_v7 = vpop.f32.mrf.mxu3 }
 0x126   : > { %v782_v50 = vpop.f32.mrf.mxu2 }
 0x127   : > { %v783_v51 = vadd.f32 %v782_v50, %v734_v48 }
 0x128   : > { %v736_v53 = vpop.f32.mrf.mxu1 }
 0x129   : > { %864 = vmatmul.f32.gmra.mxu3 %v783_v51  ;;  %v737_v56 = vadd.f32 %v736_v53, %v687_v49  ;;  %v694_v12 = vpop.f32.mrf.mxu3 }
 0x12e   : > { %v785_v59 = vpop.f32.mrf.mxu2 }
 0x12f   : > { %v786_v60 = vadd.f32 %v785_v59, %v737_v56 }
 0x130   : > { %v738_v63 = vpop.f32.mrf.mxu1 }
 0x131   : > { %867 = vmatmul.f32.gmra.mxu3 %v786_v60  ;;  %v739_v1 = vadd.f32 %v738_v63, %v689_v62 }
 0x136   : > { %v787_v3 = vpop.f32.mrf.mxu2 }
 0x137   : > { %v788_v4 = vadd.f32 %v787_v3, %v739_v1 }
 0x138   : > { %v741_v6 = vpop.f32.mrf.mxu1 }
 0x139   : > { %870 = vmatmul.f32.gmra.mxu3 %v788_v4  ;;  %v742_v8 = vadd.f32 %v741_v6, %v692_v7 }
 0x13e   : > { %v790_v9 = vpop.f32.mrf.mxu2 }
 0x13f   : > { %v791_v10 = vadd.f32 %v790_v9, %v742_v8 }
 0x140   : > { %v743_v11 = vpop.f32.mrf.mxu1 }
 0x141   : > { %873 = vmatmul.f32.gmra.mxu3 %v791_v10  ;;  %v744_v13 = vadd.f32 %v743_v11, %v694_v12 }
 0x146   : > { %v792_v14 = vpop.f32.mrf.mxu2 }
 0x147   : > { %v793_v15 = vadd.f32 %v792_v14, %v744_v13 }
 0x149   : > { %876 = vmatmul.f32.gmra.mxu3 %v793_v15 }
 0x154   : > { %v832_v17 = vpop.f32.mrf.mxu3 }
 0x155   : > { %v833_v18 = vadd.f32 %v1695_v16, %v832_v17  ;;  %v1157_v17 = vstv %s1156_s14 }
 0x156   : > { %1697 = vrcp.f32 %v1157_v17  ;;  %vm1163_vm0 = vweird.f32 %v1157_v17 }
 0x157   : > { %v880_v19 = vmax.f32 %v833_v18, 0.0 }
 0x159   : > { %932 = vmatmul.f32.vlgmr.msrb.gmra.mxu0 %v880_v19 }
 0x15c   : > { %v835_v20 = vpop.f32.mrf.mxu3 }
 0x15d   : > { %v836_v21 = vadd.f32 %v1695_v16, %v835_v20 }
 0x15f   : > { %v881_v22 = vmax.f32 %v836_v21, 0.0 }
 0x161   : > { %935 = vmatmul.f32.gmra.mxu0 %v881_v22 }
 0x164   : > { %v838_v23 = vpop.f32.mrf.mxu3 }
 0x165   : > { %v839_v24 = vadd.f32 %v1695_v16, %v838_v23  ;;  %v1698_v23 = vpop.eup %1697 }
 0x166   : > { %vm1164_vm1 = vweird.f32 %v1698_v23 }
 0x167   : > { %v882_v25 = vmax.f32 %v839_v24, 0.0  ;;  %vm1165_vm2 = vmor %vm1163_vm0, %vm1164_vm1 }
 0x169   : > { %938 = vmatmul.f32.gmra.mxu0 %v882_v25  ;;  %v1159_v25 = vmul.f32 %v1698_v23, %v1157_v17 }
 0x16c   : > { %v841_v26 = vpop.f32.mrf.mxu3 }
 0x16d   : > { %v842_v27 = vadd.f32 %v1695_v16, %v841_v26 }
 0x16f   : > { %v883_v28 = vmax.f32 %v842_v27, 0.0  ;;  %v1160_v27 = vsub.f32 1.0, %v1159_v25 }
 0x171   : > { %941 = vmatmul.f32.gmra.mxu0 %v883_v28  ;;  %v1161_v28 = vmul.f32 %v1698_v23, %v1160_v27 }
 0x174   : > { %v844_v29 = vpop.f32.mrf.mxu3 }
 0x175   : > { %v845_v30 = vadd.f32 %v1695_v16, %v844_v29  ;;  %v1169_v29 = vand.u32 2147483648, %v1157_v17 }
 0x177   : > { %v884_v31 = vmax.f32 %v845_v30, 0.0  ;;  %v1162_v30 = vadd.f32 %v1698_v23, %v1161_v28 }
 0x179   : > { %944 = vmatmul.f32.gmra.mxu0 %v884_v31  ;;  %v1167_v31 = vand.u32 2147483647, %v1157_v17 }
 0x17b   : > { %vm1168_vm3 = vcmp.eq.f32.partialorder %v1167_v31, 8.507059e+37 }
 0x17c   : > { %v847_v32 = vpop.f32.mrf.mxu3 }
 0x17d   : > { %v848_v33 = vadd.f32 %v1695_v16, %v847_v32  ;;  %v1170_v32 = vor.u32 1.1754944e-38, %v1169_v29 }
 0x17f   : > { %v885_v34 = vmax.f32 %v848_v33, 0.0  ;;  %v1166_v33 = vsel %vm1165_vm2, %v1698_v23, %v1162_v30 }
 0x181   : > { %947 = vmatmul.f32.gmra.mxu0 %v885_v34 }
 0x184   : > { %v850_v35 = vpop.f32.mrf.mxu3 }
 0x185   : > { %v851_v36 = vadd.f32 %v1695_v16, %v850_v35 }
 0x187   : > { %v886_v37 = vmax.f32 %v851_v36, 0.0  ;;  %v1171_v36 = vsel %vm1168_vm3, %v1170_v32, %v1166_v33 }
 0x188   : > { %1683 = vpush %v1171_v36 }
 0x189   : > { %950 = vmatmul.f32.gmra.mxu0 %v886_v37 }
 0x18c   : > { %v853_v38 = vpop.f32.mrf.mxu3 }
 0x18d   : > { %v854_v39 = vadd.f32 %v1695_v16, %v853_v38 }
 0x18f   : > { %v887_v40 = vmax.f32 %v854_v39, 0.0 }
 0x191   : > { %953 = vmatmul.f32.gmra.mxu0 %v887_v40 }
 0x194   : > { %v856_v41 = vpop.f32.mrf.mxu3 }
 0x195   : > { %v857_v42 = vadd.f32 %v1695_v16, %v856_v41 }
 0x197   : > { %v888_v43 = vmax.f32 %v857_v42, 0.0 }
 0x199   : > { %956 = vmatmul.f32.gmra.mxu0 %v888_v43 }
 0x19c   : > { %v859_v44 = vpop.f32.mrf.mxu3 }
 0x19d   : > { %v860_v45 = vadd.f32 %v1695_v16, %v859_v44 }
 0x19f   : > { %v889_v46 = vmax.f32 %v860_v45, 0.0  ;;  %v1030_v45 = vlaneseq }
 0x1a1   : > { %959 = vmatmul.f32.gmra.mxu0 %v889_v46 }
 0x1a4   : > { %v862_v47 = vpop.f32.mrf.mxu3 }
 0x1a5   : > { %v863_v48 = vadd.f32 %v1695_v16, %v862_v47 }
 0x1a7   : > { %v890_v49 = vmax.f32 %v863_v48, 0.0 }
 0x1a9   : > { %962 = vmatmul.f32.gmra.mxu0 %v890_v49  ;;  %v2057_v49 = vshrl.u32 %v1030_v45, 7 }
 0x1ab   : > { %v1040_v27 = vadd.s32 72, %v2057_v49  ;;  %v1041_v30 = vadd.s32 80, %v2057_v49  ;;  %v1043_v45 = vadd.s32 96, %v2057_v49 }
 0x1ac   : > { %v865_v50 = vpop.f32.mrf.mxu3 }
 0x1ad   : > { %v866_v51 = vadd.f32 %v1695_v16, %v865_v50  ;;  %v1032_v50 = vadd.s32 8, %v2057_v49 }
 0x1af   : > { %v891_v52 = vmax.f32 %v866_v51, 0.0 }
 0x1b1   : > { %965 = vmatmul.f32.gmra.mxu0 %v891_v52  ;;  %v2063_v52 = vstv %s1537_s21 }
 0x1b2   : > { %v1057_v36 = vadd.s32 %v2063_v52, %v1040_v27 }
 0x1b4   : > { %v868_v53 = vpop.f32.mrf.mxu3  ;;  %vm1073_vm13 = vcmp.lt.s32.totalorder %v1057_v36, 300 }
 0x1b5   : > { %v869_v54 = vadd.f32 %v1695_v16, %v868_v53  ;;  %v1033_v53 = vadd.s32 16, %v2057_v49 }
 0x1b7   : > { %v892_v55 = vmax.f32 %v869_v54, 0.0  ;;  %v1049_v54 = vadd.s32 %v2063_v52, %v1032_v50 }
 0x1b9   : > { %968 = vmatmul.f32.gmra.mxu0 %v892_v55  ;;  %v1034_v55 = vadd.s32 24, %v2057_v49  ;;  %vm1065_vm4 = vcmp.lt.s32.totalorder %v1049_v54, 300  ;;  %s1684_s15 = spop %1683 }
 0x1ba   : > { %s2249_s15 = smov (!%p1155_p6, %s1684_s15), 0.0 }
 0x1bc   : > { %v871_v56 = vpop.f32.mrf.mxu3 }
 0x1bd   : > { %v872_v57 = vadd.f32 %v1695_v16, %v871_v56  ;;  %v1048_v56 = vadd.s32 %v2063_v52, %v2057_v49 }
 0x1bf   : > { %v893_v58 = vmax.f32 %v872_v57, 0.0  ;;  %v1050_v57 = vadd.s32 %v2063_v52, %v1033_v53  ;;  %vm1064_vm5 = vcmp.lt.s32.totalorder %v1048_v56, 300 }
 0x1c1   : > { %971 = vmatmul.f32.gmra.mxu0 %v893_v58  ;;  %v1035_v58 = vadd.s32 32, %v2057_v49  ;;  %vm1066_vm6 = vcmp.lt.s32.totalorder %v1050_v57, 300 }
 0x1c4   : > { %v874_v59 = vpop.f32.mrf.mxu3 }
 0x1c5   : > { %v875_v60 = vadd.f32 %v1695_v16, %v874_v59 }
 0x1c7   : > { %v894_v61 = vmax.f32 %v875_v60, 0.0  ;;  %v1051_v60 = vadd.s32 %v2063_v52, %v1034_v55  ;;  %v1044_v55 = vadd.s32 104, %v2057_v49 }
 0x1c9   : > { %974 = vmatmul.f32.gmra.mxu0 %v894_v61  ;;  %v1036_v61 = vadd.s32 40, %v2057_v49  ;;  %vm1067_vm7 = vcmp.lt.s32.totalorder %v1051_v60, 300  ;;  %v1060_v60 = vadd.s32 %v2063_v52, %v1043_v45 }
 0x1cb   : > { %vm1076_vm0 = vcmp.lt.s32.totalorder %v1060_v60, 300 }
 0x1cc   : > { %v877_v62 = vpop.f32.mrf.mxu3 }
 0x1cd   : > { %v878_v63 = vadd.f32 %v1695_v16, %v877_v62 }
 0x1cf   : > { %v895_v0 = vmax.f32 %v878_v63, 0.0 }
 0x1d1   : > { %977 = vmatmul.f32.gmra.mxu0 %v895_v0  ;;  %v1052_v0 = vadd.s32 %v2063_v52, %v1035_v58 }
 0x1d3   : > { %vm1068_vm8 = vcmp.lt.s32.totalorder %v1052_v0, 300 }
 0x1d6   : > { %v933_v1 = vpop.f32.mrf.mxu0 }
 0x1d7   : > { %v934_v3 = vadd.f32 %v1999_v2, %v933_v1  ;;  %v1037_v1 = vadd.s32 48, %v2057_v49 }
 0x1d9   : > { %v2004_v6 = vmax.f32 %v934_v3, 0.0  ;;  %v1708_v3 = vmov 0.0   ;;  %v1054_v17 = vadd.s32 %v2063_v52, %v1037_v1 }
 0x1da   : > { %v2151_v0 = vsel %vm1073_vm13, 1.0, %v1708_v3 }
 0x1db   : > { %vm1070_vm10 = vcmp.lt.s32.totalorder %v1054_v17, 300 }
 0x1de   : > { %v936_v4 = vpop.f32.mrf.mxu0 }
 0x1df   : > { %v937_v5 = vadd.f32 %v1999_v2, %v936_v4  ;;  %v2079_v4 = vsel %vm1065_vm4, 1.0, %v1708_v3  ;;  %vm1245_vm4 = vcmask 1040384  }
 0x1e1   : > { %v2006_v7 = vmax.f32 %v937_v5, 0.0 }
 0x1e3   : > { %v1614_v8 = vpack.c.bf16 %v2006_v7, %v2004_v6 }
 0x1e5   : > { %1615 = vst [vmem:[%s2011_s10] sm:$0xff] %v1614_v8  }
 0x1e6   : > { %v939_v9 = vpop.f32.mrf.mxu0 }
 0x1e7   : > { %v940_v10 = vadd.f32 %v1999_v2, %v939_v9  ;;  %v1053_v9 = vadd.s32 %v2063_v52, %v1036_v61 }
 0x1e9   : > { %v2021_v13 = vmax.f32 %v940_v10, 0.0  ;;  %v1038_v10 = vadd.s32 56, %v2057_v49  ;;  %vm1069_vm9 = vcmp.lt.s32.totalorder %v1053_v9, 300 }
 0x1ea   : > { %v2116_v31 = vsel %vm1069_vm9, 1.0, %v1708_v3 }
 0x1ee   : > { %v942_v11 = vpop.f32.mrf.mxu0 }
 0x1ef   : > { %v943_v12 = vadd.f32 %v1999_v2, %v942_v11  ;;  %v2088_v11 = vsel %vm1064_vm5, 1.0, %v1708_v3 }
 0x1f1   : > { %v2023_v14 = vmax.f32 %v943_v12, 0.0  ;;  %v2091_v12 = vsel %vm1066_vm6, 1.0, %v1708_v3 }
 0x1f2   : > { %v1114_v23 = vmul.f32 %v2091_v12, %v2021_v13 }
 0x1f3   : > { %v1619_v15 = vpack.c.bf16 %v2023_v14, %v2021_v13 }
 0x1f5   : > { %1651 = vst [vmem:[%s2011_s10 + $0x8] sm:$0xff] %v1619_v15  }
 0x1f6   : > { %v945_v16 = vpop.f32.mrf.mxu0 }
 0x1f7   : > { %v946_v18 = vadd.f32 %v1999_v2, %v945_v16  ;;  %v1113_v16 = vmul.f32 %v2079_v4, %v2006_v7 }
 0x1f9   : > { %v2033_v21 = vmax.f32 %v946_v18, 0.0  ;;  %v2099_v18 = vsel %vm1067_vm7, 1.0, %v1708_v3 }
 0x1fa   : > { %v1115_v29 = vmul.f32 %v2099_v18, %v2023_v14 }
 0x1fe   : > { %v948_v19 = vpop.f32.mrf.mxu0 }
 0x1ff   : > { %v949_v20 = vadd.f32 %v1999_v2, %v948_v19  ;;  %v1039_v19 = vadd.s32 64, %v2057_v49 }
 0x201   : > { %v2035_v22 = vmax.f32 %v949_v20, 0.0  ;;  %v1112_v20 = vmul.f32 %v2088_v11, %v2004_v6  ;;  %v1056_v32 = vadd.s32 %v2063_v52, %v1039_v19 }
 0x203   : > { %v1624_v24 = vpack.c.bf16 %v2035_v22, %v2033_v21  ;;  %v1128_v28 = vadd.f32 %v1113_v16, %v1112_v20  ;;  %vm1072_vm12 = vcmp.lt.s32.totalorder %v1056_v32, 300  ;;  %v1046_v20 = vadd.s32 120, %v2057_v49 }
 0x204   : > { %v2142_v58 = vsel %vm1072_vm12, 1.0, %v1708_v3 }
 0x205   : > { %1652 = vst [vmem:[%s2011_s10 + $0x10] sm:$0xff] %v1624_v24   ;;  %v1055_v24 = vadd.s32 %v2063_v52, %v1038_v10  ;;  %v1129_v33 = vadd.f32 %v1128_v28, %v1114_v23  ;;  %v1061_v10 = vadd.s32 %v2063_v52, %v1044_v55 }
 0x206   : > { %v951_v26 = vpop.f32.mrf.mxu0 }
 0x207   : > { %v952_v34 = vadd.f32 %v1999_v2, %v951_v26  ;;  %v2109_v26 = vsel %vm1068_vm8, 1.0, %v1708_v3  ;;  %vm1071_vm11 = vcmp.lt.s32.totalorder %v1055_v24, 300  ;;  %vm1077_vm1 = vcmp.lt.s32.totalorder %v1061_v10, 300 }
 0x209   : > { %v2042_v38 = vmax.f32 %v952_v34, 0.0  ;;  %v1116_v34 = vmul.f32 %v2109_v26, %v2033_v21 }
 0x20e   : > { %v954_v35 = vpop.f32.mrf.mxu0 }
 0x20f   : > { %v955_v37 = vadd.f32 %v1999_v2, %v954_v35  ;;  %v2122_v35 = vsel %vm1070_vm10, 1.0, %v1708_v3 }
 0x210   : > { %v1118_v50 = vmul.f32 %v2122_v35, %v2042_v38 }
 0x211   : > { %v2044_v39 = vmax.f32 %v955_v37, 0.0  ;;  %v1042_v37 = vadd.s32 88, %v2057_v49 }
 0x213   : > { %v1629_v40 = vpack.c.bf16 %v2044_v39, %v2042_v38  ;;  %v1059_v53 = vadd.s32 %v2063_v52, %v1042_v37 }
 0x215   : > { %1653 = vst [vmem:[%s2011_s10 + $0x18] sm:$0xff] %v1629_v40   ;;  %v1130_v40 = vadd.f32 %v1129_v33, %v1115_v29  ;;  %vm1075_vm15 = vcmp.lt.s32.totalorder %v1059_v53, 300  ;;  %v2168_v29 = vsel %vm1076_vm0, 1.0, %v1708_v3  ;;  %v1063_v33 = vadd.s32 %v2063_v52, %v1046_v20 }
 0x216   : > { %v957_v41 = vpop.f32.mrf.mxu0  ;;  %v1549_v23 = vsel %vm1075_vm15, 1.0, %v1708_v3 }
 0x217   : > { %v958_v42 = vadd.f32 %v1999_v2, %v957_v41  ;;  %v1117_v41 = vmul.f32 %v2116_v31, %v2035_v22  ;;  %vm1079_vm3 = vcmp.lt.s32.totalorder %v1063_v33, 300 }
 0x219   : > { %v2051_v46 = vmax.f32 %v958_v42, 0.0  ;;  %v1058_v42 = vadd.s32 %v2063_v52, %v1041_v30 }
 0x21b   : > { %vm1074_vm14 = vcmp.lt.s32.totalorder %v1058_v42, 300  ;;  %v1120_v1 = vmul.f32 %v2142_v58, %v2051_v46 }
 0x21c   : > { %v1548_v16 = vsel %vm1074_vm14, 1.0, %v1708_v3 }
 0x21e   : > { %v960_v43 = vpop.f32.mrf.mxu0 }
 0x21f   : > { %v961_v44 = vadd.f32 %v1999_v2, %v960_v43  ;;  %v2130_v43 = vsel %vm1071_vm11, 1.0, %v1708_v3 }
 0x220   : > { %v1119_v57 = vmul.f32 %v2130_v43, %v2044_v39 }
 0x221   : > { %v2053_v47 = vmax.f32 %v961_v44, 0.0 }
 0x223   : > { %v1634_v48 = vpack.c.bf16 %v2053_v47, %v2051_v46  ;;  %v1121_v17 = vmul.f32 %v2151_v0, %v2053_v47 }
 0x225   : > { %1654 = vst [vmem:[%s2011_s10 + $0x20] sm:$0xff] %v1634_v48   ;;  %v1131_v48 = vadd.f32 %v1130_v40, %v1116_v34 }
 0x226   : > { %v963_v51 = vpop.f32.mrf.mxu0 }
 0x227   : > { %v964_v59 = vadd.f32 %v1999_v2, %v963_v51  ;;  %v1132_v56 = vadd.f32 %v1131_v48, %v1117_v41 }
 0x229   : > { %v2081_v5 = vmax.f32 %v964_v59, 0.0 }
 0x22b   : > { %v1122_v27 = vmul.f32 %v1548_v16, %v2081_v5 }
 0x22e   : > { %v966_v62 = vpop.f32.mrf.mxu0 }
 0x22f   : > { %v967_v63 = vadd.f32 %v1999_v2, %v966_v62  ;;  %v1045_v62 = vadd.s32 112, %v2057_v49  ;;  %v1551_v49 = vsel %vm1077_vm1, 1.0, %v1708_v3 }
 0x231   : > { %v2083_v8 = vmax.f32 %v967_v63, 0.0  ;;  %v1133_v63 = vadd.f32 %v1132_v56, %v1118_v50  ;;  %v1062_v19 = vadd.s32 %v2063_v52, %v1045_v62  ;;  %v2185_v50 = vsel %vm1079_vm3, 1.0, %v1708_v3 }
 0x233   : > { %v1639_v15 = vpack.c.bf16 %v2083_v8, %v2081_v5  ;;  %v1123_v32 = vmul.f32 %v1549_v23, %v2083_v8  ;;  %vm1078_vm2 = vcmp.lt.s32.totalorder %v1062_v19, 300 }
 0x234   : > { %v2178_v40 = vsel %vm1078_vm2, 1.0, %v1708_v3 }
 0x235   : > { %1655 = vst [vmem:[%s2011_s10 + $0x28] sm:$0xff] %v1639_v15   ;;  %v1134_v15 = vadd.f32 %v1133_v63, %v1119_v57 }
 0x236   : > { %v969_v25 = vpop.f32.mrf.mxu0 }
 0x237   : > { %v970_v44 = vadd.f32 %v1999_v2, %v969_v25  ;;  %v1135_v25 = vadd.f32 %v1134_v15, %v1120_v1  ;;  %v1174_v1 = vstv %s2249_s15 }
 0x239   : > { %v2144_v59 = vmax.f32 %v970_v44, 0.0  ;;  %v1136_v30 = vadd.f32 %v1135_v25, %v1121_v17 }
 0x23b   : > { %v1137_v34 = vadd.f32 %v1136_v30, %v1122_v27  ;;  %v1124_v36 = vmul.f32 %v2168_v29, %v2144_v59 }
 0x23d   : > { %v1138_v41 = vadd.f32 %v1137_v34, %v1123_v32 }
 0x23e   : > { %v972_v51 = vpop.f32.mrf.mxu0 }
 0x23f   : > { %v973_v54 = vadd.f32 %v1999_v2, %v972_v51  ;;  %v1139_v45 = vadd.f32 %v1138_v41, %v1124_v36 }
 0x241   : > { %v2147_v61 = vmax.f32 %v973_v54, 0.0 }
 0x243   : > { %v1644_v9 = vpack.c.bf16 %v2147_v61, %v2144_v59  ;;  %v1125_v42 = vmul.f32 %v1551_v49, %v2147_v61 }
 0x245   : > { %1656 = vst [vmem:[%s2011_s10 + $0x30] sm:$0xff] %v1644_v9   ;;  %v1140_v51 = vadd.f32 %v1139_v45, %v1125_v42 }
 0x246   : > { %v975_v24 = vpop.f32.mrf.mxu0 }
 0x247   : > { %v976_v28 = vadd.f32 %v1999_v2, %v975_v24 }
 0x249   : > { %v2175_v37 = vmax.f32 %v976_v28, 0.0 }
 0x24b   : > { %v1126_v52 = vmul.f32 %v2178_v40, %v2175_v37 }
 0x24d   : > { %v1141_v54 = vadd.f32 %v1140_v51, %v1126_v52 }
 0x24e   : > { %v978_v44 = vpop.f32.mrf.mxu0 }
 0x24f   : > { %v979_v48 = vadd.f32 %v1999_v2, %v978_v44 }
 0x251   : > { %v2187_v53 = vmax.f32 %v979_v48, 0.0 }
 0x253   : > { %v1649_v55 = vpack.c.bf16 %v2187_v53, %v2175_v37  ;;  %v1127_v56 = vmul.f32 %v2185_v50, %v2187_v53 }
 0x255   : > { %1657 = vst [vmem:[%s2011_s10 + $0x38] sm:$0xff] %v1649_v55   ;;  %v1142_v57 = vadd.f32 %v1141_v54, %v1127_v56 }
 0x257   : > { %v1143_v60 = vrot.slane %v1142_v57, 4 }
 0x259   : > { %v1144_v62 = vadd.f32 %v1143_v60, %v1142_v57 }
 0x25b   : > { %v1145_v2 = vrot.slane %v1144_v62, 2 }
 0x25d   : > { %v1146_v3 = vadd.f32 %v1145_v2, %v1144_v62 }
 0x25f   : > { %v1147_v63 = vrot.slane %v1146_v3, 1 }
 0x261   : > { %v2195_v9 = vadd.f32 %v1147_v63, %v1146_v3 }
 0x263   : > { %v1175_v10 = vmul.f32 %v1174_v1, %v2195_v9 }
 0x265   : > { %v1176_v15 = vsub.f32 %v2004_v6, %v1175_v10  ;;  %v1177_v17 = vsub.f32 %v2006_v7, %v1175_v10  ;;  %v1186_v19 = vsub.f32 %v2081_v5, %v1175_v10  ;;  %v1187_v20 = vsub.f32 %v2083_v8, %v1175_v10 }
 0x266   : > { %v1189_v24 = vsub.f32 %v2147_v61, %v1175_v10  ;;  %v1178_v25 = vsub.f32 %v2021_v13, %v1175_v10  ;;  %v1179_v30 = vsub.f32 %v2023_v14, %v1175_v10  ;;  %v1180_v6 = vsub.f32 %v2033_v21, %v1175_v10 }
 0x267   : > { %v1192_v27 = vmul.f32 %v2088_v11, %v1176_v15  ;;  %v1193_v28 = vmul.f32 %v2079_v4, %v1177_v17  ;;  %v1202_v32 = vmul.f32 %v1548_v16, %v1186_v19  ;;  %v1203_v33 = vmul.f32 %v1549_v23, %v1187_v20 }
 0x268   : > { %v1205_v34 = vmul.f32 %v1551_v49, %v1189_v24  ;;  %v1194_v7 = vmul.f32 %v2091_v12, %v1178_v25  ;;  %v1181_v8 = vsub.f32 %v2035_v22, %v1175_v10  ;;  %v1195_v61 = vmul.f32 %v2099_v18, %v1179_v30 }
 0x269   : > { %v1208_v5 = vmul.f32 %v1192_v27, %v1192_v27  ;;  %v1209_v36 = vmul.f32 %v1193_v28, %v1193_v28  ;;  %v1182_v13 = vsub.f32 %v2042_v38, %v1175_v10  ;;  %v1196_v11 = vmul.f32 %v2109_v26, %v1180_v6 }
 0x26a   : > { %v1210_v4 = vmul.f32 %v1194_v7, %v1194_v7  ;;  %v1183_v14 = vsub.f32 %v2044_v39, %v1175_v10  ;;  %v1197_v16 = vmul.f32 %v2116_v31, %v1181_v8  ;;  %v1211_v23 = vmul.f32 %v1195_v61, %v1195_v61 }
 0x26b   : > { %v1224_v41 = vadd.f32 %v1209_v36, %v1208_v5  ;;  %v1184_v12 = vsub.f32 %v2051_v46, %v1175_v10  ;;  %v1198_v49 = vmul.f32 %v2122_v35, %v1182_v13  ;;  %v1212_v42 = vmul.f32 %v1196_v11, %v1196_v11 }
 0x26c   : > { %v1185_v18 = vsub.f32 %v2053_v47, %v1175_v10  ;;  %v1199_v38 = vmul.f32 %v2130_v43, %v1183_v14  ;;  %v1213_v44 = vmul.f32 %v1197_v16, %v1197_v16  ;;  %v1188_v46 = vsub.f32 %v2144_v59, %v1175_v10 }
 0x26d   : > { %v1225_v21 = vadd.f32 %v1224_v41, %v1210_v4  ;;  %v1200_v45 = vmul.f32 %v2142_v58, %v1184_v12  ;;  %v1214_v52 = vmul.f32 %v1198_v49, %v1198_v49  ;;  %v1190_v47 = vsub.f32 %v2175_v37, %v1175_v10 }
 0x26e   : > { %v1201_v31 = vmul.f32 %v2151_v0, %v1185_v18  ;;  %v1215_v48 = vmul.f32 %v1199_v38, %v1199_v38  ;;  %v1204_v43 = vmul.f32 %v2168_v29, %v1188_v46  ;;  %v1218_v57 = vmul.f32 %v1202_v32, %v1202_v32 }
 0x26f   : > { %v1226_v22 = vadd.f32 %v1225_v21, %v1211_v23  ;;  %v1216_v54 = vmul.f32 %v1200_v45, %v1200_v45  ;;  %v1191_v58 = vsub.f32 %v2187_v53, %v1175_v10  ;;  %v1219_v62 = vmul.f32 %v1203_v33, %v1203_v33 }
 0x270   : > { %v1217_v55 = vmul.f32 %v1201_v31, %v1201_v31  ;;  %v1206_v2 = vmul.f32 %v2178_v40, %v1190_v47  ;;  %v1220_v3 = vmul.f32 %v1204_v43, %v1204_v43  ;;  %v1221_v1 = vmul.f32 %v1205_v34, %v1205_v34 }
 0x271   : > { %v1227_v26 = vadd.f32 %v1226_v22, %v1212_v42  ;;  %v1207_v63 = vmul.f32 %v2185_v50, %v1191_v58 }
 0x272   : > { %v1222_v17 = vmul.f32 %v1206_v2, %v1206_v2 }
 0x273   : > { %v1228_v39 = vadd.f32 %v1227_v26, %v1213_v44  ;;  %v1223_v19 = vmul.f32 %v1207_v63, %v1207_v63 }
 0x275   : > { %v1229_v51 = vadd.f32 %v1228_v39, %v1214_v52 }
 0x277   : > { %v1230_v35 = vadd.f32 %v1229_v51, %v1215_v48 }
 0x279   : > { %v1231_v56 = vadd.f32 %v1230_v35, %v1216_v54 }
 0x27b   : > { %v1232_v60 = vadd.f32 %v1231_v56, %v1217_v55 }
 0x27d   : > { %v1233_v0 = vadd.f32 %v1232_v60, %v1218_v57 }
 0x27f   : > { %v1234_v59 = vadd.f32 %v1233_v0, %v1219_v62 }
 0x281   : > { %v1235_v15 = vadd.f32 %v1234_v59, %v1220_v3 }
 0x283   : > { %v1236_v37 = vadd.f32 %v1235_v15, %v1221_v1 }
 0x285   : > { %v1237_v29 = vadd.f32 %v1236_v37, %v1222_v17 }
 0x287   : > { %v1238_v20 = vadd.f32 %v1237_v29, %v1223_v19 }
 0x289   : > { %v1239_v24 = vrot.slane %v1238_v20, 4 }
 0x28b   : > { %v1240_v25 = vadd.f32 %v1239_v24, %v1238_v20 }
 0x28d   : > { %v1241_v53 = vrot.slane %v1240_v25, 2 }
 0x28f   : > { %v1242_v10 = vadd.f32 %v1241_v53, %v1240_v25 }
 0x291   : > { %v1243_v27 = vrot.slane %v1242_v10, 1 }
 0x293   : > { %v1244_v40 = vadd.f32 %v1243_v27, %v1242_v10 }
 0x295   : > { %v1246_v50 = vsel %vm1245_vm4, %v2195_v9, %v1244_v40 }
 0x296   : > { %1247 = vst [vmem:[%s295_s19] sm:$0x3] %v1246_v50 }
 0x297 PF: > { %s18_s24 = sadd.s32 1, %s1705_s24  }
 0x298   : > { %p15_p8 = scmp.ge.s32.totalorder %s18_s24, 5  }
 0x29a   :  { %17 = sbr.rel (!%p15_p8) target bundleno = 1 (0x1), region = 86 }

</bundles_post_ra>
